<compile_context>
chip_gen: v5e
topology: v5e:2x2
jax: 0.10.0
libtpu: 0.0.40
codegen_flags: <defaults>
</compile_context>

<pallas_src>
import functools

import numpy as np
import jax
import jax.numpy as jnp
from jax import lax
from jax.experimental import pallas as pl
from jax.experimental.pallas import tpu as pltpu


def _pool_out_len(n, sf):
    # PyTorch MaxPool output length: kernel=sf+1, stride=sf, padding=1, ceil_mode=False
    return (n + 2 - (sf + 1)) // sf + 1


# -------------------- host-side (hoisted) selection matrices --------------------

def _dup_src(j, t, g, sf):
    """Source index for tap t of output j; invalid taps duplicate a valid
    in-window element (leaves the window max unchanged -> no -inf masking)."""
    src = sf * j - 1 + t
    if src < 0 or src > g - 1:
        src = min(sf * j, g - 1)
    return src


def _inner_lane_pool_mats(outer, g, sf):
    """(sf+1, outer*g, outer*g_o) 0/1 matrices pooling the INNER factor of a
    flattened (outer, g) lane axis:  out = max_t (x @ S[t])."""
    g_o = _pool_out_len(g, sf)
    S = np.zeros((sf + 1, outer * g, outer * g_o), np.float32)
    for t in range(sf + 1):
        for j in range(g_o):
            src = _dup_src(j, t, g, sf)
            for a in range(outer):
                S[t, a * g + src, a * g_o + j] = 1.0
    return S


def _outer_lane_pool_mats(g, inner, sf):
    """(sf+1, g*inner, g_o*inner) 0/1 matrices pooling the OUTER factor of a
    flattened (g, inner) lane axis:  out = max_t (x @ S[t])."""
    g_o = _pool_out_len(g, sf)
    S = np.zeros((sf + 1, g * inner, g_o * inner), np.float32)
    for t in range(sf + 1):
        for j in range(g_o):
            src = _dup_src(j, t, g, sf)
            for b in range(inner):
                S[t, src * inner + b, j * inner + b] = 1.0
    return S


def _row_pool_mats(tnc, g, sf):
    """(sf+1, tnc*g_o, tnc*g) block-diagonal row-selection matrices pooling the
    D (sublane) axis of a (tnc*g, L) block:  out = max_t (A[t] @ x)."""
    g_o = _pool_out_len(g, sf)
    A = np.zeros((sf + 1, tnc * g_o, tnc * g), np.float32)
    for t in range(sf + 1):
        for j in range(g_o):
            src = _dup_src(j, t, g, sf)
            for n in range(tnc):
                A[t, n * g_o + j, n * g + src] = 1.0
    return A


_MATS_CACHE = {}


def _get_pool_mats(tnc, dims, sfs):
    key = (tnc, dims, sfs)
    if key not in _MATS_CACHE:
        mats = []
        for s, sf in enumerate(sfs):
            d, h, w = dims[s]
            _, _, w2 = dims[s + 1]
            sw = _inner_lane_pool_mats(h, w, sf)        # pool W on the lane axis
            sh = _outer_lane_pool_mats(h, w2, sf)       # pool H on the lane axis
            ad = _row_pool_mats(tnc, d, sf)             # pool D on the row axis
            mats.append((jnp.asarray(sw), jnp.asarray(sh), jnp.asarray(ad)))
        _MATS_CACHE[key] = mats
    return _MATS_CACHE[key]


# ------------------------------- fused kernel ---------------------------------

def _fused_multiscale_kernel(*refs, n_scales, sfs, do_mse, w_over_n, invert):
    # refs = [target, preds(weight>0)..., (Sw, Sh, Ad) per transition..., out]
    pos = 0
    tgt_ref = refs[pos]; pos += 1
    pred_refs = []
    for s in range(n_scales):
        if do_mse[s]:
            pred_refs.append(refs[pos]); pos += 1
        else:
            pred_refs.append(None)
    sel_refs = []
    for _ in range(n_scales - 1):
        sel_refs.append((refs[pos], refs[pos + 1], refs[pos + 2]))
        pos += 3
    out_ref = refs[pos]

    x = tgt_ref[...].astype(jnp.float32)            # (TNC*D0, H0*W0)
    if invert:
        x = 1.0 - x                                 # fused target inversion

    total = jnp.zeros((1, 1), jnp.float32)
    for s in range(n_scales):
        if do_mse[s]:
            d = pred_refs[s][...].astype(jnp.float32) - x
            sse = jnp.sum(jnp.sum(d * d, axis=-1, keepdims=True),
                          axis=0, keepdims=True)
            total = total + w_over_n[s] * sse       # weight / numel folded in
        if s < n_scales - 1:
            sf = sfs[s]
            sw_ref, sh_ref, ad_ref = sel_refs[s]
            # separable k=sf+1 / stride=sf / pad=1 max pool: W, H (lane matmuls),
            # then D (row matmuls).  Selection matrices are hoisted, resident inputs.
            for mat_ref, lhs in ((sw_ref, False), (sh_ref, False), (ad_ref, True)):
                y = None
                for t in range(sf + 1):
                    m = mat_ref[t]
                    v = (jnp.dot(m, x, preferred_element_type=jnp.float32) if lhs
                         else jnp.dot(x, m, preferred_element_type=jnp.float32))
                    y = v if y is None else jnp.maximum(y, v)
                x = y

    # lane-dense per-block partial loss (lane 0 holds the value, rest zero)
    lane = lax.broadcasted_iota(jnp.int32, (1, 128), 1)
    out_ref[0] = jnp.where(lane == 0, total, 0.0)


# ------------------------------ JAX wrapper -----------------------------------

def _choose_tnc(nc, d0, per_slab_bytes, row_target=256, budget_bytes=24 << 20):
    """Pick slabs-per-block: divides N*C, keeps sublane blocks legal
    (multiple of 8 or the whole axis), targets TNC*D0 ~ row_target rows."""
    cands = [t for t in range(1, nc + 1)
             if nc % t == 0 and (t % 8 == 0 or t == nc)]
    fits = [t for t in cands if 2 * t * per_slab_bytes <= budget_bytes]
    pref = [t for t in fits if t * d0 <= row_target]
    if pref:
        return max(pref)
    if fits:
        return min(fits)
    # TODO(synk): halo-tiled gridding over D/H for volumes whose single-slab
    # working set exceeds VMEM; fall back to the smallest legal block for now.
    return min(cands)


def _multiscale_loss_call(predictions, target, *, sfs, weights, invert):
    n_scales = len(predictions)
    assert target.ndim == 5, target.shape
    N, C, D0, H0, W0 = target.shape
    NC = N * C

    dims = [(D0, H0, W0)]
    for sf in sfs:
        d, h, w = dims[-1]
        dims.append((_pool_out_len(d, sf), _pool_out_len(h, sf), _pool_out_len(w, sf)))
    for s, p in enumerate(predictions):
        assert p.shape == (N, C) + dims[s], (s, p.shape, (N, C) + dims[s])

    do_mse = tuple(float(ws) > 0.0 for ws in weights)
    w_over_n = tuple(
        float(weights[s]) / float(N * C * dims[s][0] * dims[s][1] * dims[s][2])
        if do_mse[s] else 0.0
        for s in range(n_scales))

    per_slab_bytes = 4 * (dims[0][0] * dims[0][1] * dims[0][2]
                          + sum(dims[s][0] * dims[s][1] * dims[s][2]
                                for s in range(n_scales) if do_mse[s]))
    tnc = _choose_tnc(NC, D0, per_slab_bytes)
    num_blocks = NC // tnc

    args, in_specs = [], []

    # target / predictions viewed as (N*C*D_s, H_s*W_s): free row-major reshapes
    args.append(target.reshape(NC * D0, H0 * W0))
    in_specs.append(pl.BlockSpec((tnc * D0, H0 * W0), lambda i: (i, 0)))

    for s in range(n_scales):
        if do_mse[s]:            # zero-weight scales: no pred operand, no DMA
            d, h, w = dims[s]
            args.append(predictions[s].reshape(NC * d, h * w))
            in_specs.append(pl.BlockSpec((tnc * d, h * w), lambda i: (i, 0)))

    for sw, sh, ad in _get_pool_mats(tnc, tuple(dims), tuple(int(sf) for sf in sfs)):
        for m in (sw, sh, ad):   # resident, constant index_map -> loaded once
            args.append(m)
            in_specs.append(pl.BlockSpec(m.shape, lambda i: (0, 0, 0)))

    kernel = functools.partial(
        _fused_multiscale_kernel, n_scales=n_scales,
        sfs=tuple(int(sf) for sf in sfs), do_mse=do_mse,
        w_over_n=w_over_n, invert=bool(invert))

    out = pl.pallas_call(
        kernel,
        grid=(num_blocks,),
        in_specs=in_specs,
        out_specs=pl.BlockSpec((1, 1, 128), lambda i: (i, 0, 0)),
        out_shape=jax.ShapeDtypeStruct((num_blocks, 1, 128), jnp.float32),
        compiler_params=pltpu.CompilerParams(
            # per-block partial sums -> no cross-step state -> megacore-friendly
            dimension_semantics=("parallel",),
            # 48 MiB is safe on v5e/v6e (128 MiB VMEM) and leaves headroom on
            # v7x (64 MiB physical); blocks above are sized against ~24 MiB.
            vmem_limit_bytes=48 * 1024 * 1024),
    )(*args)

    return jnp.sum(out[:, 0, 0])


class MultiScaleLossMaxPool:
    """JAX/Pallas port of neurofire's MultiScaleLossMaxPool (forward pass).

    The wrapped `loss` criterion is fixed to MSE with 'mean' reduction.
    """

    def __init__(self, scaling_factor=2, n_scales=4, scale_weights=None,
                 invert_target=True, retain_segmentation=False):
        assert isinstance(scaling_factor, int)
        # TODO(synk): AnisotropicPool (tuple/list scaling factors) not implemented.
        # TODO(synk): retain_segmentation / Downsampler strided-slice path not implemented.
        assert not retain_segmentation
        self.n_scales = n_scales
        self.scaling_factor = (n_scales - 1) * [scaling_factor]
        if scale_weights is None:
            self.scale_weights = [1.0 / 4 ** s for s in range(n_scales)]
        else:
            assert len(scale_weights) == n_scales
            self.scale_weights = list(scale_weights)
        self.invert_target = invert_target

    def __call__(self, predictions, target):
        assert isinstance(predictions, (list, tuple))
        assert len(predictions) == self.n_scales
        return _multiscale_loss_call(
            list(predictions), target, sfs=self.scaling_factor,
            weights=self.scale_weights, invert=self.invert_target)


# ----------------------------------- main --------------------------------------

if __name__ == "__main__":
    key = jax.random.PRNGKey(0)
    N, C, D, H, W = 2, 4, 8, 16, 16
    k_t, *k_p = jax.random.split(key, 5)

    target = jax.random.uniform(k_t, (N, C, D, H, W), dtype=jnp.float32)

    module = MultiScaleLossMaxPool(scaling_factor=2, n_scales=4)

    # prediction shapes implied by the max-pool pyramid
    shapes = [(N, C, D, H, W)]
    d, h, w = D, H, W
    for sf in module.scaling_factor:
        d, h, w = (_pool_out_len(d, sf), _pool_out_len(h, sf), _pool_out_len(w, sf))
        shapes.append((N, C, d, h, w))
    predictions = [jax.random.normal(k, s, dtype=jnp.float32)
                   for k, s in zip(k_p, shapes)]

    loss = module(predictions, target)
    loss = jax.block_until_ready(loss)

    # pure-JAX reference check
    tgt = 1.0 - target
    ref_targets = [tgt]
    cur = tgt
    for sf in module.scaling_factor:
        cur = lax.reduce_window(
            cur, jnp.array(-jnp.inf, dtype=cur.dtype), lax.max,
            (1, 1, sf + 1, sf + 1, sf + 1), (1, 1, sf, sf, sf),
            ((0, 0), (0, 0), (1, 1), (1, 1), (1, 1)))
        ref_targets.append(cur)
    ref = sum(wt * jnp.mean((p - t) ** 2)
              for p, t, wt in zip(predictions, ref_targets, module.scale_weights))

    assert np.allclose(np.asarray(loss), np.asarray(ref), rtol=1e-4, atol=1e-6), (
        float(loss), float(ref))

    print("KERNEL_OK")
</pallas_src>

<mosaic_0001>
module attributes {stable_mosaic.version = 11 : i64} {
  func.func @_fused_multiscale_kernel(%arg0: i32, %arg1: memref<64x256xf32, #tpu.memory_space<vmem>>, %arg2: memref<64x256xf32, #tpu.memory_space<vmem>>, %arg3: memref<32x64xf32, #tpu.memory_space<vmem>>, %arg4: memref<16x16xf32, #tpu.memory_space<vmem>>, %arg5: memref<8x4xf32, #tpu.memory_space<vmem>>, %arg6: memref<3x256x128xf32, #tpu.memory_space<vmem>>, %arg7: memref<3x128x64xf32, #tpu.memory_space<vmem>>, %arg8: memref<3x32x64xf32, #tpu.memory_space<vmem>>, %arg9: memref<3x64x32xf32, #tpu.memory_space<vmem>>, %arg10: memref<3x32x16xf32, #tpu.memory_space<vmem>>, %arg11: memref<3x16x32xf32, #tpu.memory_space<vmem>>, %arg12: memref<3x16x8xf32, #tpu.memory_space<vmem>>, %arg13: memref<3x8x4xf32, #tpu.memory_space<vmem>>, %arg14: memref<3x8x16xf32, #tpu.memory_space<vmem>>, %arg15: memref<1x1x128xf32, #tpu.memory_space<vmem>>) attributes {dimension_semantics = [#tpu.dimension_semantics<parallel>], iteration_bounds = array<i64: 1>, scalar_prefetch = 0 : i64, scratch_operands = 0 : i64, tpu.core_type = #tpu.core_type<tc>, window_params = [{transform_indices = @transform_0, window_bounds = array<i64: 64, 256>}, {transform_indices = @transform_1, window_bounds = array<i64: 64, 256>}, {transform_indices = @transform_2, window_bounds = array<i64: 32, 64>}, {transform_indices = @transform_3, window_bounds = array<i64: 16, 16>}, {transform_indices = @transform_4, window_bounds = array<i64: 8, 4>}, {pipeline_mode = #tpu.pipeline_mode<synchronous>, transform_indices = @transform_5, window_bounds = array<i64: 3, 256, 128>}, {pipeline_mode = #tpu.pipeline_mode<synchronous>, transform_indices = @transform_6, window_bounds = array<i64: 3, 128, 64>}, {pipeline_mode = #tpu.pipeline_mode<synchronous>, transform_indices = @transform_7, window_bounds = array<i64: 3, 32, 64>}, {pipeline_mode = #tpu.pipeline_mode<synchronous>, transform_indices = @transform_8, window_bounds = array<i64: 3, 64, 32>}, {pipeline_mode = #tpu.pipeline_mode<synchronous>, transform_indices = @transform_9, window_bounds = array<i64: 3, 32, 16>}, {pipeline_mode = #tpu.pipeline_mode<synchronous>, transform_indices = @transform_10, window_bounds = array<i64: 3, 16, 32>}, {pipeline_mode = #tpu.pipeline_mode<synchronous>, transform_indices = @transform_11, window_bounds = array<i64: 3, 16, 8>}, {pipeline_mode = #tpu.pipeline_mode<synchronous>, transform_indices = @transform_12, window_bounds = array<i64: 3, 8, 4>}, {pipeline_mode = #tpu.pipeline_mode<synchronous>, transform_indices = @transform_13, window_bounds = array<i64: 3, 8, 16>}, {transform_indices = @transform_14, window_bounds = array<i64: 1, 1, 128>}]} {
    %c0 = arith.constant 0 : index
    %c0_0 = arith.constant 0 : index
    %0 = vector.load %arg1[%c0, %c0_0] : memref<64x256xf32, #tpu.memory_space<vmem>>, vector<64x256xf32>
    %cst = arith.constant 1.000000e+00 : f32
    %1 = vector.broadcast %cst : f32 to vector<64x256xf32>
    %2 = arith.subf %1, %0 : vector<64x256xf32>
    %cst_1 = arith.constant 0.000000e+00 : f32
    %3 = vector.broadcast %cst_1 : f32 to vector<1x1xf32>
    %c0_2 = arith.constant 0 : index
    %c0_3 = arith.constant 0 : index
    %4 = vector.load %arg2[%c0_2, %c0_3] : memref<64x256xf32, #tpu.memory_space<vmem>>, vector<64x256xf32>
    %5 = arith.subf %4, %2 : vector<64x256xf32>
    %6 = arith.mulf %5, %5 : vector<64x256xf32>
    %cst_4 = arith.constant dense<0.000000e+00> : vector<64xf32>
    %7 = vector.multi_reduction <add>, %6, %cst_4 [1] : vector<64x256xf32> to vector<64xf32>
    %8 = vector.shape_cast %7 : vector<64xf32> to vector<64x1xf32>
    %cst_5 = arith.constant dense<0.000000e+00> : vector<1xf32>
    %9 = vector.multi_reduction <add>, %8, %cst_5 [0] : vector<64x1xf32> to vector<1xf32>
    %10 = vector.shape_cast %9 : vector<1xf32> to vector<1x1xf32>
    %cst_6 = arith.constant 6.10351563E-5 : f32
    %11 = vector.broadcast %cst_6 : f32 to vector<1x1xf32>
    %12 = arith.mulf %11, %10 : vector<1x1xf32>
    %13 = arith.addf %3, %12 : vector<1x1xf32>
    %c0_7 = arith.constant 0 : index
    %c0_8 = arith.constant 0 : index
    %c0_9 = arith.constant 0 : index
    %14 = vector.load %arg6[%c0_7, %c0_8, %c0_9] : memref<3x256x128xf32, #tpu.memory_space<vmem>>, vector<1x256x128xf32>
    %15 = vector.shape_cast %14 : vector<1x256x128xf32> to vector<256x128xf32>
    %cst_10 = arith.constant dense<0.000000e+00> : vector<64x128xf32>
    %16 = tpu.matmul %2, %15, %cst_10 {dimension_numbers = #tpu.dot_dimension_numbers<[1], [0], [0], [1], [0, 0, 1, 1], [], []>} : vector<64x256xf32>, vector<256x128xf32>, vector<64x128xf32> -> vector<64x128xf32>
    %c1 = arith.constant 1 : index
    %c0_11 = arith.constant 0 : index
    %c0_12 = arith.constant 0 : index
    %17 = vector.load %arg6[%c1, %c0_11, %c0_12] : memref<3x256x128xf32, #tpu.memory_space<vmem>>, vector<1x256x128xf32>
    %18 = vector.shape_cast %17 : vector<1x256x128xf32> to vector<256x128xf32>
    %cst_13 = arith.constant dense<0.000000e+00> : vector<64x128xf32>
    %19 = tpu.matmul %2, %18, %cst_13 {dimension_numbers = #tpu.dot_dimension_numbers<[1], [0], [0], [1], [0, 0, 1, 1], [], []>} : vector<64x256xf32>, vector<256x128xf32>, vector<64x128xf32> -> vector<64x128xf32>
    %20 = arith.maximumf %16, %19 : vector<64x128xf32>
    %c2 = arith.constant 2 : index
    %c0_14 = arith.constant 0 : index
    %c0_15 = arith.constant 0 : index
    %21 = vector.load %arg6[%c2, %c0_14, %c0_15] : memref<3x256x128xf32, #tpu.memory_space<vmem>>, vector<1x256x128xf32>
    %22 = vector.shape_cast %21 : vector<1x256x128xf32> to vector<256x128xf32>
    %cst_16 = arith.constant dense<0.000000e+00> : vector<64x128xf32>
    %23 = tpu.matmul %2, %22, %cst_16 {dimension_numbers = #tpu.dot_dimension_numbers<[1], [0], [0], [1], [0, 0, 1, 1], [], []>} : vector<64x256xf32>, vector<256x128xf32>, vector<64x128xf32> -> vector<64x128xf32>
    %24 = arith.maximumf %20, %23 : vector<64x128xf32>
    %c0_17 = arith.constant 0 : index
    %c0_18 = arith.constant 0 : index
    %c0_19 = arith.constant 0 : index
    %25 = vector.load %arg7[%c0_17, %c0_18, %c0_19] : memref<3x128x64xf32, #tpu.memory_space<vmem>>, vector<1x128x64xf32>
    %26 = vector.shape_cast %25 : vector<1x128x64xf32> to vector<128x64xf32>
    %cst_20 = arith.constant dense<0.000000e+00> : vector<64x64xf32>
    %27 = tpu.matmul %24, %26, %cst_20 {dimension_numbers = #tpu.dot_dimension_numbers<[1], [0], [0], [1], [0, 0, 1, 1], [], []>} : vector<64x128xf32>, vector<128x64xf32>, vector<64x64xf32> -> vector<64x64xf32>
    %c1_21 = arith.constant 1 : index
    %c0_22 = arith.constant 0 : index
    %c0_23 = arith.constant 0 : index
    %28 = vector.load %arg7[%c1_21, %c0_22, %c0_23] : memref<3x128x64xf32, #tpu.memory_space<vmem>>, vector<1x128x64xf32>
    %29 = vector.shape_cast %28 : vector<1x128x64xf32> to vector<128x64xf32>
    %cst_24 = arith.constant dense<0.000000e+00> : vector<64x64xf32>
    %30 = tpu.matmul %24, %29, %cst_24 {dimension_numbers = #tpu.dot_dimension_numbers<[1], [0], [0], [1], [0, 0, 1, 1], [], []>} : vector<64x128xf32>, vector<128x64xf32>, vector<64x64xf32> -> vector<64x64xf32>
    %31 = arith.maximumf %27, %30 : vector<64x64xf32>
    %c2_25 = arith.constant 2 : index
    %c0_26 = arith.constant 0 : index
    %c0_27 = arith.constant 0 : index
    %32 = vector.load %arg7[%c2_25, %c0_26, %c0_27] : memref<3x128x64xf32, #tpu.memory_space<vmem>>, vector<1x128x64xf32>
    %33 = vector.shape_cast %32 : vector<1x128x64xf32> to vector<128x64xf32>
    %cst_28 = arith.constant dense<0.000000e+00> : vector<64x64xf32>
    %34 = tpu.matmul %24, %33, %cst_28 {dimension_numbers = #tpu.dot_dimension_numbers<[1], [0], [0], [1], [0, 0, 1, 1], [], []>} : vector<64x128xf32>, vector<128x64xf32>, vector<64x64xf32> -> vector<64x64xf32>
    %35 = arith.maximumf %31, %34 : vector<64x64xf32>
    %c0_29 = arith.constant 0 : index
    %c0_30 = arith.constant 0 : index
    %c0_31 = arith.constant 0 : index
    %36 = vector.load %arg8[%c0_29, %c0_30, %c0_31] : memref<3x32x64xf32, #tpu.memory_space<vmem>>, vector<1x32x64xf32>
    %37 = vector.shape_cast %36 : vector<1x32x64xf32> to vector<32x64xf32>
    %cst_32 = arith.constant dense<0.000000e+00> : vector<32x64xf32>
    %38 = tpu.matmul %37, %35, %cst_32 {dimension_numbers = #tpu.dot_dimension_numbers<[1], [0], [0], [1], [0, 0, 1, 1], [], []>} : vector<32x64xf32>, vector<64x64xf32>, vector<32x64xf32> -> vector<32x64xf32>
    %c1_33 = arith.constant 1 : index
    %c0_34 = arith.constant 0 : index
    %c0_35 = arith.constant 0 : index
    %39 = vector.load %arg8[%c1_33, %c0_34, %c0_35] : memref<3x32x64xf32, #tpu.memory_space<vmem>>, vector<1x32x64xf32>
    %40 = vector.shape_cast %39 : vector<1x32x64xf32> to vector<32x64xf32>
    %cst_36 = arith.constant dense<0.000000e+00> : vector<32x64xf32>
    %41 = tpu.matmul %40, %35, %cst_36 {dimension_numbers = #tpu.dot_dimension_numbers<[1], [0], [0], [1], [0, 0, 1, 1], [], []>} : vector<32x64xf32>, vector<64x64xf32>, vector<32x64xf32> -> vector<32x64xf32>
    %42 = arith.maximumf %38, %41 : vector<32x64xf32>
    %c2_37 = arith.constant 2 : index
    %c0_38 = arith.constant 0 : index
    %c0_39 = arith.constant 0 : index
    %43 = vector.load %arg8[%c2_37, %c0_38, %c0_39] : memref<3x32x64xf32, #tpu.memory_space<vmem>>, vector<1x32x64xf32>
    %44 = vector.shape_cast %43 : vector<1x32x64xf32> to vector<32x64xf32>
    %cst_40 = arith.constant dense<0.000000e+00> : vector<32x64xf32>
    %45 = tpu.matmul %44, %35, %cst_40 {dimension_numbers = #tpu.dot_dimension_numbers<[1], [0], [0], [1], [0, 0, 1, 1], [], []>} : vector<32x64xf32>, vector<64x64xf32>, vector<32x64xf32> -> vector<32x64xf32>
    %46 = arith.maximumf %42, %45 : vector<32x64xf32>
    %c0_41 = arith.constant 0 : index
    %c0_42 = arith.constant 0 : index
    %47 = vector.load %arg3[%c0_41, %c0_42] : memref<32x64xf32, #tpu.memory_space<vmem>>, vector<32x64xf32>
    %48 = arith.subf %47, %46 : vector<32x64xf32>
    %49 = arith.mulf %48, %48 : vector<32x64xf32>
    %cst_43 = arith.constant dense<0.000000e+00> : vector<32xf32>
    %50 = vector.multi_reduction <add>, %49, %cst_43 [1] : vector<32x64xf32> to vector<32xf32>
    %51 = vector.shape_cast %50 : vector<32xf32> to vector<32x1xf32>
    %cst_44 = arith.constant dense<0.000000e+00> : vector<1xf32>
    %52 = vector.multi_reduction <add>, %51, %cst_44 [0] : vector<32x1xf32> to vector<1xf32>
    %53 = vector.shape_cast %52 : vector<1xf32> to vector<1x1xf32>
    %cst_45 = arith.constant 1.22070313E-4 : f32
    %54 = vector.broadcast %cst_45 : f32 to vector<1x1xf32>
    %55 = arith.mulf %54, %53 : vector<1x1xf32>
    %56 = arith.addf %13, %55 : vector<1x1xf32>
    %c0_46 = arith.constant 0 : index
    %c0_47 = arith.constant 0 : index
    %c0_48 = arith.constant 0 : index
    %57 = vector.load %arg9[%c0_46, %c0_47, %c0_48] : memref<3x64x32xf32, #tpu.memory_space<vmem>>, vector<1x64x32xf32>
    %58 = vector.shape_cast %57 : vector<1x64x32xf32> to vector<64x32xf32>
    %cst_49 = arith.constant dense<0.000000e+00> : vector<32x32xf32>
    %59 = tpu.matmul %46, %58, %cst_49 {dimension_numbers = #tpu.dot_dimension_numbers<[1], [0], [0], [1], [0, 0, 1, 1], [], []>} : vector<32x64xf32>, vector<64x32xf32>, vector<32x32xf32> -> vector<32x32xf32>
    %c1_50 = arith.constant 1 : index
    %c0_51 = arith.constant 0 : index
    %c0_52 = arith.constant 0 : index
    %60 = vector.load %arg9[%c1_50, %c0_51, %c0_52] : memref<3x64x32xf32, #tpu.memory_space<vmem>>, vector<1x64x32xf32>
    %61 = vector.shape_cast %60 : vector<1x64x32xf32> to vector<64x32xf32>
    %cst_53 = arith.constant dense<0.000000e+00> : vector<32x32xf32>
    %62 = tpu.matmul %46, %61, %cst_53 {dimension_numbers = #tpu.dot_dimension_numbers<[1], [0], [0], [1], [0, 0, 1, 1], [], []>} : vector<32x64xf32>, vector<64x32xf32>, vector<32x32xf32> -> vector<32x32xf32>
    %63 = arith.maximumf %59, %62 : vector<32x32xf32>
    %c2_54 = arith.constant 2 : index
    %c0_55 = arith.constant 0 : index
    %c0_56 = arith.constant 0 : index
    %64 = vector.load %arg9[%c2_54, %c0_55, %c0_56] : memref<3x64x32xf32, #tpu.memory_space<vmem>>, vector<1x64x32xf32>
    %65 = vector.shape_cast %64 : vector<1x64x32xf32> to vector<64x32xf32>
    %cst_57 = arith.constant dense<0.000000e+00> : vector<32x32xf32>
    %66 = tpu.matmul %46, %65, %cst_57 {dimension_numbers = #tpu.dot_dimension_numbers<[1], [0], [0], [1], [0, 0, 1, 1], [], []>} : vector<32x64xf32>, vector<64x32xf32>, vector<32x32xf32> -> vector<32x32xf32>
    %67 = arith.maximumf %63, %66 : vector<32x32xf32>
    %c0_58 = arith.constant 0 : index
    %c0_59 = arith.constant 0 : index
    %c0_60 = arith.constant 0 : index
    %68 = vector.load %arg10[%c0_58, %c0_59, %c0_60] : memref<3x32x16xf32, #tpu.memory_space<vmem>>, vector<1x32x16xf32>
    %69 = vector.shape_cast %68 : vector<1x32x16xf32> to vector<32x16xf32>
    %cst_61 = arith.constant dense<0.000000e+00> : vector<32x16xf32>
    %70 = tpu.matmul %67, %69, %cst_61 {dimension_numbers = #tpu.dot_dimension_numbers<[1], [0], [0], [1], [0, 0, 1, 1], [], []>} : vector<32x32xf32>, vector<32x16xf32>, vector<32x16xf32> -> vector<32x16xf32>
    %c1_62 = arith.constant 1 : index
    %c0_63 = arith.constant 0 : index
    %c0_64 = arith.constant 0 : index
    %71 = vector.load %arg10[%c1_62, %c0_63, %c0_64] : memref<3x32x16xf32, #tpu.memory_space<vmem>>, vector<1x32x16xf32>
    %72 = vector.shape_cast %71 : vector<1x32x16xf32> to vector<32x16xf32>
    %cst_65 = arith.constant dense<0.000000e+00> : vector<32x16xf32>
    %73 = tpu.matmul %67, %72, %cst_65 {dimension_numbers = #tpu.dot_dimension_numbers<[1], [0], [0], [1], [0, 0, 1, 1], [], []>} : vector<32x32xf32>, vector<32x16xf32>, vector<32x16xf32> -> vector<32x16xf32>
    %74 = arith.maximumf %70, %73 : vector<32x16xf32>
    %c2_66 = arith.constant 2 : index
    %c0_67 = arith.constant 0 : index
    %c0_68 = arith.constant 0 : index
    %75 = vector.load %arg10[%c2_66, %c0_67, %c0_68] : memref<3x32x16xf32, #tpu.memory_space<vmem>>, vector<1x32x16xf32>
    %76 = vector.shape_cast %75 : vector<1x32x16xf32> to vector<32x16xf32>
    %cst_69 = arith.constant dense<0.000000e+00> : vector<32x16xf32>
    %77 = tpu.matmul %67, %76, %cst_69 {dimension_numbers = #tpu.dot_dimension_numbers<[1], [0], [0], [1], [0, 0, 1, 1], [], []>} : vector<32x32xf32>, vector<32x16xf32>, vector<32x16xf32> -> vector<32x16xf32>
    %78 = arith.maximumf %74, %77 : vector<32x16xf32>
    %c0_70 = arith.constant 0 : index
    %c0_71 = arith.constant 0 : index
    %c0_72 = arith.constant 0 : index
    %79 = vector.load %arg11[%c0_70, %c0_71, %c0_72] : memref<3x16x32xf32, #tpu.memory_space<vmem>>, vector<1x16x32xf32>
    %80 = vector.shape_cast %79 : vector<1x16x32xf32> to vector<16x32xf32>
    %cst_73 = arith.constant dense<0.000000e+00> : vector<16x16xf32>
    %81 = tpu.matmul %80, %78, %cst_73 {dimension_numbers = #tpu.dot_dimension_numbers<[1], [0], [0], [1], [0, 0, 1, 1], [], []>} : vector<16x32xf32>, vector<32x16xf32>, vector<16x16xf32> -> vector<16x16xf32>
    %c1_74 = arith.constant 1 : index
    %c0_75 = arith.constant 0 : index
    %c0_76 = arith.constant 0 : index
    %82 = vector.load %arg11[%c1_74, %c0_75, %c0_76] : memref<3x16x32xf32, #tpu.memory_space<vmem>>, vector<1x16x32xf32>
    %83 = vector.shape_cast %82 : vector<1x16x32xf32> to vector<16x32xf32>
    %cst_77 = arith.constant dense<0.000000e+00> : vector<16x16xf32>
    %84 = tpu.matmul %83, %78, %cst_77 {dimension_numbers = #tpu.dot_dimension_numbers<[1], [0], [0], [1], [0, 0, 1, 1], [], []>} : vector<16x32xf32>, vector<32x16xf32>, vector<16x16xf32> -> vector<16x16xf32>
    %85 = arith.maximumf %81, %84 : vector<16x16xf32>
    %c2_78 = arith.constant 2 : index
    %c0_79 = arith.constant 0 : index
    %c0_80 = arith.constant 0 : index
    %86 = vector.load %arg11[%c2_78, %c0_79, %c0_80] : memref<3x16x32xf32, #tpu.memory_space<vmem>>, vector<1x16x32xf32>
    %87 = vector.shape_cast %86 : vector<1x16x32xf32> to vector<16x32xf32>
    %cst_81 = arith.constant dense<0.000000e+00> : vector<16x16xf32>
    %88 = tpu.matmul %87, %78, %cst_81 {dimension_numbers = #tpu.dot_dimension_numbers<[1], [0], [0], [1], [0, 0, 1, 1], [], []>} : vector<16x32xf32>, vector<32x16xf32>, vector<16x16xf32> -> vector<16x16xf32>
    %89 = arith.maximumf %85, %88 : vector<16x16xf32>
    %c0_82 = arith.constant 0 : index
    %c0_83 = arith.constant 0 : index
    %90 = vector.load %arg4[%c0_82, %c0_83] : memref<16x16xf32, #tpu.memory_space<vmem>>, vector<16x16xf32>
    %91 = arith.subf %90, %89 : vector<16x16xf32>
    %92 = arith.mulf %91, %91 : vector<16x16xf32>
    %cst_84 = arith.constant dense<0.000000e+00> : vector<16xf32>
    %93 = vector.multi_reduction <add>, %92, %cst_84 [1] : vector<16x16xf32> to vector<16xf32>
    %94 = vector.shape_cast %93 : vector<16xf32> to vector<16x1xf32>
    %cst_85 = arith.constant dense<0.000000e+00> : vector<1xf32>
    %95 = vector.multi_reduction <add>, %94, %cst_85 [0] : vector<16x1xf32> to vector<1xf32>
    %96 = vector.shape_cast %95 : vector<1xf32> to vector<1x1xf32>
    %cst_86 = arith.constant 2.44140625E-4 : f32
    %97 = vector.broadcast %cst_86 : f32 to vector<1x1xf32>
    %98 = arith.mulf %97, %96 : vector<1x1xf32>
    %99 = arith.addf %56, %98 : vector<1x1xf32>
    %c0_87 = arith.constant 0 : index
    %c0_88 = arith.constant 0 : index
    %c0_89 = arith.constant 0 : index
    %100 = vector.load %arg12[%c0_87, %c0_88, %c0_89] : memref<3x16x8xf32, #tpu.memory_space<vmem>>, vector<1x16x8xf32>
    %101 = vector.shape_cast %100 : vector<1x16x8xf32> to vector<16x8xf32>
    %cst_90 = arith.constant dense<0.000000e+00> : vector<16x8xf32>
    %102 = tpu.matmul %89, %101, %cst_90 {dimension_numbers = #tpu.dot_dimension_numbers<[1], [0], [0], [1], [0, 0, 1, 1], [], []>} : vector<16x16xf32>, vector<16x8xf32>, vector<16x8xf32> -> vector<16x8xf32>
    %c1_91 = arith.constant 1 : index
    %c0_92 = arith.constant 0 : index
    %c0_93 = arith.constant 0 : index
    %103 = vector.load %arg12[%c1_91, %c0_92, %c0_93] : memref<3x16x8xf32, #tpu.memory_space<vmem>>, vector<1x16x8xf32>
    %104 = vector.shape_cast %103 : vector<1x16x8xf32> to vector<16x8xf32>
    %cst_94 = arith.constant dense<0.000000e+00> : vector<16x8xf32>
    %105 = tpu.matmul %89, %104, %cst_94 {dimension_numbers = #tpu.dot_dimension_numbers<[1], [0], [0], [1], [0, 0, 1, 1], [], []>} : vector<16x16xf32>, vector<16x8xf32>, vector<16x8xf32> -> vector<16x8xf32>
    %106 = arith.maximumf %102, %105 : vector<16x8xf32>
    %c2_95 = arith.constant 2 : index
    %c0_96 = arith.constant 0 : index
    %c0_97 = arith.constant 0 : index
    %107 = vector.load %arg12[%c2_95, %c0_96, %c0_97] : memref<3x16x8xf32, #tpu.memory_space<vmem>>, vector<1x16x8xf32>
    %108 = vector.shape_cast %107 : vector<1x16x8xf32> to vector<16x8xf32>
    %cst_98 = arith.constant dense<0.000000e+00> : vector<16x8xf32>
    %109 = tpu.matmul %89, %108, %cst_98 {dimension_numbers = #tpu.dot_dimension_numbers<[1], [0], [0], [1], [0, 0, 1, 1], [], []>} : vector<16x16xf32>, vector<16x8xf32>, vector<16x8xf32> -> vector<16x8xf32>
    %110 = arith.maximumf %106, %109 : vector<16x8xf32>
    %c0_99 = arith.constant 0 : index
    %c0_100 = arith.constant 0 : index
    %c0_101 = arith.constant 0 : index
    %111 = vector.load %arg13[%c0_99, %c0_100, %c0_101] : memref<3x8x4xf32, #tpu.memory_space<vmem>>, vector<1x8x4xf32>
    %112 = vector.shape_cast %111 : vector<1x8x4xf32> to vector<8x4xf32>
    %cst_102 = arith.constant dense<0.000000e+00> : vector<16x4xf32>
    %113 = tpu.matmul %110, %112, %cst_102 {dimension_numbers = #tpu.dot_dimension_numbers<[1], [0], [0], [1], [0, 0, 1, 1], [], []>} : vector<16x8xf32>, vector<8x4xf32>, vector<16x4xf32> -> vector<16x4xf32>
    %c1_103 = arith.constant 1 : index
    %c0_104 = arith.constant 0 : index
    %c0_105 = arith.constant 0 : index
    %114 = vector.load %arg13[%c1_103, %c0_104, %c0_105] : memref<3x8x4xf32, #tpu.memory_space<vmem>>, vector<1x8x4xf32>
    %115 = vector.shape_cast %114 : vector<1x8x4xf32> to vector<8x4xf32>
    %cst_106 = arith.constant dense<0.000000e+00> : vector<16x4xf32>
    %116 = tpu.matmul %110, %115, %cst_106 {dimension_numbers = #tpu.dot_dimension_numbers<[1], [0], [0], [1], [0, 0, 1, 1], [], []>} : vector<16x8xf32>, vector<8x4xf32>, vector<16x4xf32> -> vector<16x4xf32>
    %117 = arith.maximumf %113, %116 : vector<16x4xf32>
    %c2_107 = arith.constant 2 : index
    %c0_108 = arith.constant 0 : index
    %c0_109 = arith.constant 0 : index
    %118 = vector.load %arg13[%c2_107, %c0_108, %c0_109] : memref<3x8x4xf32, #tpu.memory_space<vmem>>, vector<1x8x4xf32>
    %119 = vector.shape_cast %118 : vector<1x8x4xf32> to vector<8x4xf32>
    %cst_110 = arith.constant dense<0.000000e+00> : vector<16x4xf32>
    %120 = tpu.matmul %110, %119, %cst_110 {dimension_numbers = #tpu.dot_dimension_numbers<[1], [0], [0], [1], [0, 0, 1, 1], [], []>} : vector<16x8xf32>, vector<8x4xf32>, vector<16x4xf32> -> vector<16x4xf32>
    %121 = arith.maximumf %117, %120 : vector<16x4xf32>
    %c0_111 = arith.constant 0 : index
    %c0_112 = arith.constant 0 : index
    %c0_113 = arith.constant 0 : index
    %122 = vector.load %arg14[%c0_111, %c0_112, %c0_113] : memref<3x8x16xf32, #tpu.memory_space<vmem>>, vector<1x8x16xf32>
    %123 = vector.shape_cast %122 : vector<1x8x16xf32> to vector<8x16xf32>
    %cst_114 = arith.constant dense<0.000000e+00> : vector<8x4xf32>
    %124 = tpu.matmul %123, %121, %cst_114 {dimension_numbers = #tpu.dot_dimension_numbers<[1], [0], [0], [1], [0, 0, 1, 1], [], []>} : vector<8x16xf32>, vector<16x4xf32>, vector<8x4xf32> -> vector<8x4xf32>
    %c1_115 = arith.constant 1 : index
    %c0_116 = arith.constant 0 : index
    %c0_117 = arith.constant 0 : index
    %125 = vector.load %arg14[%c1_115, %c0_116, %c0_117] : memref<3x8x16xf32, #tpu.memory_space<vmem>>, vector<1x8x16xf32>
    %126 = vector.shape_cast %125 : vector<1x8x16xf32> to vector<8x16xf32>
    %cst_118 = arith.constant dense<0.000000e+00> : vector<8x4xf32>
    %127 = tpu.matmul %126, %121, %cst_118 {dimension_numbers = #tpu.dot_dimension_numbers<[1], [0], [0], [1], [0, 0, 1, 1], [], []>} : vector<8x16xf32>, vector<16x4xf32>, vector<8x4xf32> -> vector<8x4xf32>
    %128 = arith.maximumf %124, %127 : vector<8x4xf32>
    %c2_119 = arith.constant 2 : index
    %c0_120 = arith.constant 0 : index
    %c0_121 = arith.constant 0 : index
    %129 = vector.load %arg14[%c2_119, %c0_120, %c0_121] : memref<3x8x16xf32, #tpu.memory_space<vmem>>, vector<1x8x16xf32>
    %130 = vector.shape_cast %129 : vector<1x8x16xf32> to vector<8x16xf32>
    %cst_122 = arith.constant dense<0.000000e+00> : vector<8x4xf32>
    %131 = tpu.matmul %130, %121, %cst_122 {dimension_numbers = #tpu.dot_dimension_numbers<[1], [0], [0], [1], [0, 0, 1, 1], [], []>} : vector<8x16xf32>, vector<16x4xf32>, vector<8x4xf32> -> vector<8x4xf32>
    %132 = arith.maximumf %128, %131 : vector<8x4xf32>
    %c0_123 = arith.constant 0 : index
    %c0_124 = arith.constant 0 : index
    %133 = vector.load %arg5[%c0_123, %c0_124] : memref<8x4xf32, #tpu.memory_space<vmem>>, vector<8x4xf32>
    %134 = arith.subf %133, %132 : vector<8x4xf32>
    %135 = arith.mulf %134, %134 : vector<8x4xf32>
    %cst_125 = arith.constant dense<0.000000e+00> : vector<8xf32>
    %136 = vector.multi_reduction <add>, %135, %cst_125 [1] : vector<8x4xf32> to vector<8xf32>
    %137 = vector.shape_cast %136 : vector<8xf32> to vector<8x1xf32>
    %cst_126 = arith.constant dense<0.000000e+00> : vector<1xf32>
    %138 = vector.multi_reduction <add>, %137, %cst_126 [0] : vector<8x1xf32> to vector<1xf32>
    %139 = vector.shape_cast %138 : vector<1xf32> to vector<1x1xf32>
    %cst_127 = arith.constant 4.8828125E-4 : f32
    %140 = vector.broadcast %cst_127 : f32 to vector<1x1xf32>
    %141 = arith.mulf %140, %139 : vector<1x1xf32>
    %142 = arith.addf %99, %141 : vector<1x1xf32>
    %143 = tpu.iota {dimensions = array<i32: 1>} : vector<1x128xi32>
    %c0_i32 = arith.constant 0 : i32
    %144 = vector.broadcast %c0_i32 : i32 to vector<1x128xi32>
    %145 = arith.cmpi eq, %143, %144 : vector<1x128xi32>
    %cst_128 = arith.constant 0.000000e+00 : f32
    %146 = vector.shape_cast %142 : vector<1x1xf32> to vector<1x1xf32>
    %147 = vector.broadcast %146 : vector<1x1xf32> to vector<1x128xf32>
    %148 = vector.broadcast %cst_128 : f32 to vector<1x128xf32>
    %149 = arith.select %145, %147, %148 : vector<1x128xi1>, vector<1x128xf32>
    %c0_129 = arith.constant 0 : index
    %c0_130 = arith.constant 0 : index
    %c0_131 = arith.constant 0 : index
    %150 = vector.load %arg15[%c0_129, %c0_130, %c0_131] : memref<1x1x128xf32, #tpu.memory_space<vmem>>, vector<1x1x128xf32>
    %151 = vector.shape_cast %150 : vector<1x1x128xf32> to vector<1x128xf32>
    %152 = vector.shape_cast %149 : vector<1x128xf32> to vector<1x1x128xf32>
    tpu.vector_store %arg15[%c0_129, %c0_130, %c0_131], %152 {strides = array<i32>} : memref<1x1x128xf32, #tpu.memory_space<vmem>>, vector<1x1x128xf32>,
    return
  }
  func.func @transform_0(%arg0: i32) -> (i32, i32) {
    %c0_i32 = arith.constant 0 : i32
    %c0_i32_0 = arith.constant 0 : i32
    return %arg0, %c0_i32 : i32, i32
  }
  func.func @transform_1(%arg0: i32) -> (i32, i32) {
    %c0_i32 = arith.constant 0 : i32
    %c0_i32_0 = arith.constant 0 : i32
    return %arg0, %c0_i32 : i32, i32
  }
  func.func @transform_2(%arg0: i32) -> (i32, i32) {
    %c0_i32 = arith.constant 0 : i32
    %c0_i32_0 = arith.constant 0 : i32
    return %arg0, %c0_i32 : i32, i32
  }
  func.func @transform_3(%arg0: i32) -> (i32, i32) {
    %c0_i32 = arith.constant 0 : i32
    %c0_i32_0 = arith.constant 0 : i32
    return %arg0, %c0_i32 : i32, i32
  }
  func.func @transform_4(%arg0: i32) -> (i32, i32) {
    %c0_i32 = arith.constant 0 : i32
    %c0_i32_0 = arith.constant 0 : i32
    return %arg0, %c0_i32 : i32, i32
  }
  func.func @transform_5(%arg0: i32) -> (i32, i32, i32) {
    %c0_i32 = arith.constant 0 : i32
    %c0_i32_0 = arith.constant 0 : i32
    %c0_i32_1 = arith.constant 0 : i32
    %c0_i32_2 = arith.constant 0 : i32
    return %c0_i32, %c0_i32_0, %c0_i32_1 : i32, i32, i32
  }
  func.func @transform_6(%arg0: i32) -> (i32, i32, i32) {
    %c0_i32 = arith.constant 0 : i32
    %c0_i32_0 = arith.constant 0 : i32
    %c0_i32_1 = arith.constant 0 : i32
    %c0_i32_2 = arith.constant 0 : i32
    return %c0_i32, %c0_i32_0, %c0_i32_1 : i32, i32, i32
  }
  func.func @transform_7(%arg0: i32) -> (i32, i32, i32) {
    %c0_i32 = arith.constant 0 : i32
    %c0_i32_0 = arith.constant 0 : i32
    %c0_i32_1 = arith.constant 0 : i32
    %c0_i32_2 = arith.constant 0 : i32
    return %c0_i32, %c0_i32_0, %c0_i32_1 : i32, i32, i32
  }
  func.func @transform_8(%arg0: i32) -> (i32, i32, i32) {
    %c0_i32 = arith.constant 0 : i32
    %c0_i32_0 = arith.constant 0 : i32
    %c0_i32_1 = arith.constant 0 : i32
    %c0_i32_2 = arith.constant 0 : i32
    return %c0_i32, %c0_i32_0, %c0_i32_1 : i32, i32, i32
  }
  func.func @transform_9(%arg0: i32) -> (i32, i32, i32) {
    %c0_i32 = arith.constant 0 : i32
    %c0_i32_0 = arith.constant 0 : i32
    %c0_i32_1 = arith.constant 0 : i32
    %c0_i32_2 = arith.constant 0 : i32
    return %c0_i32, %c0_i32_0, %c0_i32_1 : i32, i32, i32
  }
  func.func @transform_10(%arg0: i32) -> (i32, i32, i32) {
    %c0_i32 = arith.constant 0 : i32
    %c0_i32_0 = arith.constant 0 : i32
    %c0_i32_1 = arith.constant 0 : i32
    %c0_i32_2 = arith.constant 0 : i32
    return %c0_i32, %c0_i32_0, %c0_i32_1 : i32, i32, i32
  }
  func.func @transform_11(%arg0: i32) -> (i32, i32, i32) {
    %c0_i32 = arith.constant 0 : i32
    %c0_i32_0 = arith.constant 0 : i32
    %c0_i32_1 = arith.constant 0 : i32
    %c0_i32_2 = arith.constant 0 : i32
    return %c0_i32, %c0_i32_0, %c0_i32_1 : i32, i32, i32
  }
  func.func @transform_12(%arg0: i32) -> (i32, i32, i32) {
    %c0_i32 = arith.constant 0 : i32
    %c0_i32_0 = arith.constant 0 : i32
    %c0_i32_1 = arith.constant 0 : i32
    %c0_i32_2 = arith.constant 0 : i32
    return %c0_i32, %c0_i32_0, %c0_i32_1 : i32, i32, i32
  }
  func.func @transform_13(%arg0: i32) -> (i32, i32, i32) {
    %c0_i32 = arith.constant 0 : i32
    %c0_i32_0 = arith.constant 0 : i32
    %c0_i32_1 = arith.constant 0 : i32
    %c0_i32_2 = arith.constant 0 : i32
    return %c0_i32, %c0_i32_0, %c0_i32_1 : i32, i32, i32
  }
  func.func @transform_14(%arg0: i32) -> (i32, i32, i32) {
    %c0_i32 = arith.constant 0 : i32
    %c0_i32_0 = arith.constant 0 : i32
    %c0_i32_1 = arith.constant 0 : i32
    return %arg0, %c0_i32, %c0_i32_0 : i32, i32, i32
  }
}

</mosaic_0001>

<bundles_post_ra>
// kernel: tpu_custom_call.1
= control target key start
LH: loop header
LB: loop body
LE: loop exit
PB: predicated region body
PF: predicated region fallthrough
CT: control target
= control target key end

     0   :  { %19 = vsyncpa [#allocation3], 0  ;;  %s2513_s0 = inlined_call_operand.vmem [shape: f32[64,256], index: 0, kind: input, shape index: {}]   ;;  %s2514_s1 = inlined_call_operand.vmem [shape: f32[64,256], index: 1, kind: input, shape index: {}]   ;;  %s2515_s2 = inlined_call_operand.vmem [shape: f32[32,64], index: 2, kind: input, shape index: {}]   ;;  %s2516_s3 = inlined_call_operand.vmem [shape: f32[16,16], index: 3, kind: input, shape index: {}]   ;;  %s2517_s4 = inlined_call_operand.vmem [shape: f32[8,4], index: 4, kind: input, shape index: {}]   ;;  %s2518_s5 = inlined_call_operand.hbm [shape: f32[3,256,128], index: 5, kind: input, shape index: {}]   ;;  %s2519_s6 = inlined_call_operand.vmem [shape: f32[3,128,64], index: 6, kind: input, shape index: {}]   ;;  %s2520_s7 = inlined_call_operand.vmem [shape: f32[3,32,64], index: 7, kind: input, shape index: {}]   ;;  %s2521_s8 = inlined_call_operand.vmem [shape: f32[3,64,32], index: 8, kind: input, shape index: {}]   ;;  %s2522_s9 = inlined_call_operand.vmem [shape: f32[3,32,16], index: 9, kind: input, shape index: {}]   ;;  %s2523_s10 = inlined_call_operand.vmem [shape: f32[3,16,32], index: 10, kind: input, shape index: {}]   ;;  %s2524_s11 = inlined_call_operand.vmem [shape: f32[3,16,8], index: 11, kind: input, shape index: {}]   ;;  %s2525_s12 = inlined_call_operand.vmem [shape: f32[3,8,4], index: 12, kind: input, shape index: {}]   ;;  %s2526_s13 = inlined_call_operand.vmem [shape: f32[3,8,16], index: 13, kind: input, shape index: {}]   ;;  %s2527_s14 = inlined_call_operand.hbm [shape: f32[1,1,128], index: 14, kind: output, shape index: {}]  }
   0x1   :  { %20 = vsyncpa [#allocation4], 0  ;;  %s35_s15 = sshll.u32 %s2518_s5, 4  ;;  %s1763_s16 = smov [#allocation2]   ;;  %s36_s15 = int_to_ptr.hbm [resolvable:$true] %s35_s15 }
   0x2   :  { %s37_s17 = sshll.u32 %s1763_s16, 4  ;;  %s1764_s18 = smov 128   ;;  %s38_s17 = int_to_ptr.vmem [resolvable:$true] %s37_s17 }
   0x3   :  { %s1765_s19 = smov 8  }
   0x4   :  { %43 = dma.hbm_to_vmem [thread:$0]  %s36_s15, 12288, %s38_s17, [#allocation3], %s1764_s18, %s1764_s18, %s1765_s19  }
   0x5   :  { %1759 = dma.done.wait [#allocation3], 12288  }
   0x6   :  { %1760 = vsyncadd [#allocation3], 4294955008  ;;  %v198_v0 = vld [vmem:[#allocation2 + $0x78] sm:$0xff]  ;;  %v197_v4 = vld [vmem:[#allocation2 + $0x70] sm:$0xff]  ;;  %vm736_vm0 = vcmask 523264   ;;  %vm1050_vm1 = vcmask 261120  }
   0x7   :  { %v214_v1 = vld [vmem:[#allocation2 + $0xf8] sm:$0xff]  ;;  %215 = vmatpush.msra.mxu0 %v198_v0  ;;  %v213_v5 = vld [vmem:[#allocation2 + $0xf0] sm:$0xff]  ;;  %v196_v8 = vld [vmem:[#allocation2 + $0x68] sm:$0xff]  ;;  %vm1273_vm2 = vcmask 130048   ;;  %vm1377_vm3 = vcmask 64512   ;;  %vm1540_vm4 = vcmask 31744  }
   0x8   :  { %v313_v2 = vld [vmem:[#allocation2 + $0x178] sm:$0xff]  ;;  %256 = vmatpush.msra.mxu1 %v214_v1  ;;  %v312_v6 = vld [vmem:[#allocation2 + $0x170] sm:$0xff]  ;;  %v212_v9 = vld [vmem:[#allocation2 + $0xe8] sm:$0xff]  ;;  %s1564_s27 = sshll.u32 %s2527_s14, 4  ;;  %s1565_s27 = int_to_ptr.hbm [resolvable:$true] %s1564_s27 }
   0x9   :  { %v329_v3 = vld [vmem:[#allocation2 + $0x1f8] sm:$0xff]  ;;  %330 = vmatpush.msra.mxu2 %v313_v2  ;;  %v328_v7 = vld [vmem:[#allocation2 + $0x1f0] sm:$0xff]  ;;  %216 = vmatpush.msra.mxu0 %v197_v4  ;;  %v311_v10 = vld [vmem:[#allocation2 + $0x168] sm:$0xff] }
   0xa   :  { %371 = vmatpush.msra.mxu3 %v329_v3  ;;  %257 = vmatpush.msra.mxu1 %v213_v5  ;;  %v327_v11 = vld [vmem:[#allocation2 + $0x1e8] sm:$0xff]  ;;  %v195_v12 = vld [vmem:[#allocation2 + $0x60] sm:$0xff]  ;;  %v194_v16 = vld [vmem:[#allocation2 + $0x58] sm:$0xff] }
   0xb   :  { %331 = vmatpush.msra.mxu2 %v312_v6  ;;  %v211_v13 = vld [vmem:[#allocation2 + $0xe0] sm:$0xff]  ;;  %217 = vmatpush.msra.mxu0 %v196_v8  ;;  %v210_v17 = vld [vmem:[#allocation2 + $0xd8] sm:$0xff]  ;;  %v193_v20 = vld [vmem:[#allocation2 + $0x50] sm:$0xff] }
   0xc   :  { %372 = vmatpush.msra.mxu3 %v328_v7  ;;  %258 = vmatpush.msra.mxu1 %v212_v9  ;;  %v310_v14 = vld [vmem:[#allocation2 + $0x160] sm:$0xff]  ;;  %v309_v18 = vld [vmem:[#allocation2 + $0x158] sm:$0xff]  ;;  %v209_v21 = vld [vmem:[#allocation2 + $0xd0] sm:$0xff] }
   0xd   :  { %v326_v15 = vld [vmem:[#allocation2 + $0x1e0] sm:$0xff]  ;;  %332 = vmatpush.msra.mxu2 %v311_v10  ;;  %218 = vmatpush.msra.mxu0 %v195_v12  ;;  %v325_v19 = vld [vmem:[#allocation2 + $0x1d8] sm:$0xff]  ;;  %v308_v22 = vld [vmem:[#allocation2 + $0x150] sm:$0xff] }
   0xe   :  { %373 = vmatpush.msra.mxu3 %v327_v11  ;;  %259 = vmatpush.msra.mxu1 %v211_v13  ;;  %v324_v23 = vld [vmem:[#allocation2 + $0x1d0] sm:$0xff]  ;;  %v192_v24 = vld [vmem:[#allocation2 + $0x48] sm:$0xff]  ;;  %v191_v28 = vld [vmem:[#allocation2 + $0x40] sm:$0xff] }
   0xf   :  { %333 = vmatpush.msra.mxu2 %v310_v14  ;;  %219 = vmatpush.msra.mxu0 %v194_v16  ;;  %v208_v25 = vld [vmem:[#allocation2 + $0xc8] sm:$0xff]  ;;  %v207_v29 = vld [vmem:[#allocation2 + $0xc0] sm:$0xff]  ;;  %v190_v32 = vld [vmem:[#allocation2 + $0x38] sm:$0xff] }
  0x10   :  { %374 = vmatpush.msra.mxu3 %v326_v15  ;;  %260 = vmatpush.msra.mxu1 %v210_v17  ;;  %v307_v26 = vld [vmem:[#allocation2 + $0x148] sm:$0xff]  ;;  %v306_v30 = vld [vmem:[#allocation2 + $0x140] sm:$0xff]  ;;  %v206_v33 = vld [vmem:[#allocation2 + $0xb8] sm:$0xff] }
  0x11   :  { %334 = vmatpush.msra.mxu2 %v309_v18  ;;  %220 = vmatpush.msra.mxu0 %v193_v20  ;;  %v323_v27 = vld [vmem:[#allocation2 + $0x1c8] sm:$0xff]  ;;  %v322_v31 = vld [vmem:[#allocation2 + $0x1c0] sm:$0xff]  ;;  %v305_v34 = vld [vmem:[#allocation2 + $0x138] sm:$0xff] }
  0x12   :  { %375 = vmatpush.msra.mxu3 %v325_v19  ;;  %261 = vmatpush.msra.mxu1 %v209_v21  ;;  %v321_v35 = vld [vmem:[#allocation2 + $0x1b8] sm:$0xff]  ;;  %v189_v36 = vld [vmem:[#allocation2 + $0x30] sm:$0xff]  ;;  %v188_v40 = vld [vmem:[#allocation2 + $0x28] sm:$0xff] }
  0x13   :  { %335 = vmatpush.msra.mxu2 %v308_v22  ;;  %221 = vmatpush.msra.mxu0 %v192_v24  ;;  %v205_v37 = vld [vmem:[#allocation2 + $0xb0] sm:$0xff]  ;;  %v204_v41 = vld [vmem:[#allocation2 + $0xa8] sm:$0xff]  ;;  %v187_v44 = vld [vmem:[#allocation2 + $0x20] sm:$0xff] }
  0x14   :  { %376 = vmatpush.msra.mxu3 %v324_v23  ;;  %262 = vmatpush.msra.mxu1 %v208_v25  ;;  %v304_v38 = vld [vmem:[#allocation2 + $0x130] sm:$0xff]  ;;  %v303_v42 = vld [vmem:[#allocation2 + $0x128] sm:$0xff]  ;;  %v203_v45 = vld [vmem:[#allocation2 + $0xa0] sm:$0xff] }
  0x15   :  { %336 = vmatpush.msra.mxu2 %v307_v26  ;;  %222 = vmatpush.msra.mxu0 %v191_v28  ;;  %v320_v39 = vld [vmem:[#allocation2 + $0x1b0] sm:$0xff]  ;;  %v319_v43 = vld [vmem:[#allocation2 + $0x1a8] sm:$0xff]  ;;  %v302_v46 = vld [vmem:[#allocation2 + $0x120] sm:$0xff] }
  0x16   :  { %377 = vmatpush.msra.mxu3 %v323_v27  ;;  %263 = vmatpush.msra.mxu1 %v207_v29  ;;  %v318_v47 = vld [vmem:[#allocation2 + $0x1a0] sm:$0xff]  ;;  %v186_v48 = vld [vmem:[#allocation2 + $0x18] sm:$0xff]  ;;  %v185_v52 = vld [vmem:[#allocation2 + $0x10] sm:$0xff] }
  0x17   :  { %337 = vmatpush.msra.mxu2 %v306_v30  ;;  %223 = vmatpush.msra.mxu0 %v190_v32  ;;  %v202_v49 = vld [vmem:[#allocation2 + $0x98] sm:$0xff]  ;;  %v201_v53 = vld [vmem:[#allocation2 + $0x90] sm:$0xff]  ;;  %v184_v56 = vld [vmem:[#allocation2 + $0x8] sm:$0xff] }
  0x18   :  { %378 = vmatpush.msra.mxu3 %v322_v31  ;;  %264 = vmatpush.msra.mxu1 %v206_v33  ;;  %v301_v50 = vld [vmem:[#allocation2 + $0x118] sm:$0xff]  ;;  %v300_v54 = vld [vmem:[#allocation2 + $0x110] sm:$0xff]  ;;  %v200_v57 = vld [vmem:[#allocation2 + $0x88] sm:$0xff] }
  0x19   :  { %338 = vmatpush.msra.mxu2 %v305_v34  ;;  %224 = vmatpush.msra.mxu0 %v189_v36  ;;  %v317_v51 = vld [vmem:[#allocation2 + $0x198] sm:$0xff]  ;;  %v316_v55 = vld [vmem:[#allocation2 + $0x190] sm:$0xff]  ;;  %v64_v58 = vld [vmem:[%s2513_s0] sm:$0xff] }
  0x1a   :  { %379 = vmatpush.msra.mxu3 %v321_v35  ;;  %265 = vmatpush.msra.mxu1 %v205_v37  ;;  %v65_v59 = vld [vmem:[%s2513_s0 + $0x8] sm:$0xff]  ;;  %v183_v62 = vld [vmem:[#allocation2] sm:$0xff]  ;;  %v1851_v2 = vsub.f32 1.0, %v64_v58  ;;  %v66_v4 = vld [vmem:[%s2513_s0 + $0x10] sm:$0xff] }
  0x1b   :  { %339 = vmatpush.msra.mxu2 %v304_v38  ;;  %225 = vmatpush.msra.mxu0 %v188_v40  ;;  %v299_v60 = vld [vmem:[#allocation2 + $0x108] sm:$0xff]  ;;  %v199_v63 = vld [vmem:[#allocation2 + $0x80] sm:$0xff]  ;;  %v1853_v3 = vsub.f32 1.0, %v65_v59  ;;  %v67_v5 = vld [vmem:[%s2513_s0 + $0x18] sm:$0xff]  ;;  %v1865_v12 = vsub.f32 1.0, %v66_v4 }
  0x1c   :  { %380 = vmatpush.msra.mxu3 %v320_v39  ;;  %266 = vmatpush.msra.mxu1 %v204_v41  ;;  %v315_v61 = vld [vmem:[#allocation2 + $0x188] sm:$0xff]  ;;  %v298_v0 = vld [vmem:[#allocation2 + $0x100] sm:$0xff]  ;;  %v436_v6 = vld [vmem:[#allocation2 + $0x278] sm:$0xff]  ;;  %v1867_v13 = vsub.f32 1.0, %v67_v5 }
  0x1d   :  { %340 = vmatpush.msra.mxu2 %v303_v42  ;;  %226 = vmatpush.msra.mxu0 %v187_v44  ;;  %v314_v1 = vld [vmem:[#allocation2 + $0x180] sm:$0xff]  ;;  %v452_v7 = vld [vmem:[#allocation2 + $0x2f8] sm:$0xff]  ;;  %v435_v8 = vld [vmem:[#allocation2 + $0x270] sm:$0xff] }
  0x1e   :  { %381 = vmatpush.msra.mxu3 %v319_v43  ;;  %267 = vmatpush.msra.mxu1 %v203_v45  ;;  %v451_v9 = vld [vmem:[#allocation2 + $0x2f0] sm:$0xff]  ;;  %v434_v10 = vld [vmem:[#allocation2 + $0x268] sm:$0xff]  ;;  %v433_v14 = vld [vmem:[#allocation2 + $0x260] sm:$0xff] }
  0x1f   :  { %341 = vmatpush.msra.mxu2 %v302_v46  ;;  %227 = vmatpush.msra.mxu0 %v186_v48  ;;  %v450_v11 = vld [vmem:[#allocation2 + $0x2e8] sm:$0xff]  ;;  %v449_v15 = vld [vmem:[#allocation2 + $0x2e0] sm:$0xff]  ;;  %v432_v18 = vld [vmem:[#allocation2 + $0x258] sm:$0xff] }
  0x20   :  { %382 = vmatpush.msra.mxu3 %v318_v47  ;;  %268 = vmatpush.msra.mxu1 %v202_v49  ;;  %v68_v16 = vld [vmem:[%s2513_s0 + $0x20] sm:$0xff]  ;;  %v69_v17 = vld [vmem:[%s2513_s0 + $0x28] sm:$0xff]  ;;  %v448_v19 = vld [vmem:[#allocation2 + $0x2d8] sm:$0xff] }
  0x21   :  { %342 = vmatpush.msra.mxu2 %v301_v50  ;;  %228 = vmatpush.msra.mxu0 %v185_v52  ;;  %v431_v20 = vld [vmem:[#allocation2 + $0x250] sm:$0xff]  ;;  %v1879_v22 = vsub.f32 1.0, %v68_v16  ;;  %v1881_v23 = vsub.f32 1.0, %v69_v17  ;;  %v430_v24 = vld [vmem:[#allocation2 + $0x248] sm:$0xff]  ;;  %v71_v27 = vld [vmem:[%s2513_s0 + $0x38] sm:$0xff] }
  0x22   :  { %383 = vmatpush.msra.mxu3 %v317_v51  ;;  %269 = vmatpush.msra.mxu1 %v201_v53  ;;  %v447_v21 = vld [vmem:[#allocation2 + $0x2d0] sm:$0xff]  ;;  %v446_v25 = vld [vmem:[#allocation2 + $0x2c8] sm:$0xff]  ;;  %v429_v28 = vld [vmem:[#allocation2 + $0x240] sm:$0xff]  ;;  %v1895_v33 = vsub.f32 1.0, %v71_v27 }
  0x23   :  { %343 = vmatpush.msra.mxu2 %v300_v54  ;;  %229 = vmatpush.msra.mxu0 %v184_v56  ;;  %v70_v26 = vld [vmem:[%s2513_s0 + $0x30] sm:$0xff]  ;;  %v445_v29 = vld [vmem:[#allocation2 + $0x2c0] sm:$0xff]  ;;  %v428_v30 = vld [vmem:[#allocation2 + $0x238] sm:$0xff] }
  0x24   :  { %384 = vmatpush.msra.mxu3 %v316_v55  ;;  %270 = vmatpush.msra.mxu1 %v200_v57  ;;  %v444_v31 = vld [vmem:[#allocation2 + $0x2b8] sm:$0xff]  ;;  %v1893_v32 = vsub.f32 1.0, %v70_v26  ;;  %v427_v34 = vld [vmem:[#allocation2 + $0x230] sm:$0xff]  ;;  %v72_v36 = vld [vmem:[%s2513_s0 + $0x40] sm:$0xff] }
  0x25   :  { %344 = vmatpush.msra.mxu2 %v299_v60  ;;  %230 = vmatpush.msra.mxu0 %v183_v62  ;;  %v443_v35 = vld [vmem:[#allocation2 + $0x2b0] sm:$0xff]  ;;  %v73_v37 = vld [vmem:[%s2513_s0 + $0x48] sm:$0xff]  ;;  %v425_v40 = vld [vmem:[#allocation2 + $0x220] sm:$0xff]  ;;  %v1907_v42 = vsub.f32 1.0, %v72_v36 }
  0x26   :  { %385 = vmatpush.msra.mxu3 %v315_v61  ;;  %271 = vmatpush.msra.mxu1 %v199_v63  ;;  %v426_v38 = vld [vmem:[#allocation2 + $0x228] sm:$0xff]  ;;  %v441_v41 = vld [vmem:[#allocation2 + $0x2a0] sm:$0xff]  ;;  %v1909_v43 = vsub.f32 1.0, %v73_v37  ;;  %v424_v44 = vld [vmem:[#allocation2 + $0x218] sm:$0xff] }
  0x27   :  { %345 = vmatpush.msra.mxu2 %v298_v0  ;;  %231 = vmatmul.f32.vlgmr.msra.gmra.mxu0 %v1851_v2  ;;  %v442_v39 = vld [vmem:[#allocation2 + $0x2a8] sm:$0xff]  ;;  %v440_v45 = vld [vmem:[#allocation2 + $0x298] sm:$0xff]  ;;  %v74_v46 = vld [vmem:[%s2513_s0 + $0x50] sm:$0xff] }
  0x28   :  { %386 = vmatpush.msra.mxu3 %v314_v1  ;;  %272 = vmatmul.f32.vlgmr.msra.gmra.mxu1 %v1853_v3  ;;  %v75_v47 = vld [vmem:[%s2513_s0 + $0x58] sm:$0xff]  ;;  %v423_v48 = vld [vmem:[#allocation2 + $0x210] sm:$0xff]  ;;  %v422_v50 = vld [vmem:[#allocation2 + $0x208] sm:$0xff]  ;;  %v1921_v52 = vsub.f32 1.0, %v74_v46 }
  0x29   :  { %346 = vmatmul.f32.vlgmr.msra.gmra.mxu2 %v1851_v2  ;;  %387 = vmatmul.f32.vlgmr.msra.gmra.mxu3 %v1853_v3  ;;  %v439_v49 = vld [vmem:[#allocation2 + $0x290] sm:$0xff]  ;;  %v438_v51 = vld [vmem:[#allocation2 + $0x288] sm:$0xff]  ;;  %v1923_v53 = vsub.f32 1.0, %v75_v47  ;;  %v421_v54 = vld [vmem:[#allocation2 + $0x200] sm:$0xff] }
  0x2a   :  { %453 = vmatpush.msrb.mxu0 %v436_v6  ;;  %494 = vmatpush.msrb.mxu1 %v452_v7  ;;  %v437_v55 = vld [vmem:[#allocation2 + $0x280] sm:$0xff]  ;;  %v77_v57 = vld [vmem:[%s2513_s0 + $0x68] sm:$0xff]  ;;  %v78_v60 = vld [vmem:[%s2513_s0 + $0x70] sm:$0xff] }
  0x2b   :  { %v76_v56 = vld [vmem:[%s2513_s0 + $0x60] sm:$0xff]  ;;  %v1937_v59 = vsub.f32 1.0, %v77_v57  ;;  %v79_v61 = vld [vmem:[%s2513_s0 + $0x78] sm:$0xff]  ;;  %v1949_v62 = vsub.f32 1.0, %v78_v60  ;;  %v1603_v16 = vld [vmem:[%s2519_s6 + $0x168] sm:$0xff] }
  0x2c   :  { %454 = vmatpush.msrb.mxu0 %v435_v8  ;;  %495 = vmatpush.msrb.mxu1 %v451_v9  ;;  %v1935_v58 = vsub.f32 1.0, %v76_v56  ;;  %v1951_v63 = vsub.f32 1.0, %v79_v61  ;;  %v558_v4 = vld [vmem:[%s2519_s6 + $0x78] sm:$0xff]  ;;  %v557_v9 = vld [vmem:[%s2519_s6 + $0x70] sm:$0xff]  ;;  %v555_v17 = vld [vmem:[%s2519_s6 + $0x60] sm:$0xff] }
  0x2d   :  { %v1589_v5 = vld [vmem:[%s2519_s6 + $0xf8] sm:$0xff]  ;;  %559 = vmatpush.msrb.mxu2 %v558_v4  ;;  %v553_v27 = vld [vmem:[%s2519_s6 + $0x50] sm:$0xff]  ;;  %v1582_v36 = vld [vmem:[%s2519_s6 + $0xc0] sm:$0xff] }
  0x2e   :  { %455 = vmatpush.msrb.mxu0 %v434_v10  ;;  %496 = vmatpush.msrb.mxu1 %v450_v11  ;;  %v1605_v6 = vld [vmem:[%s2519_s6 + $0x178] sm:$0xff]  ;;  %v1588_v10 = vld [vmem:[%s2519_s6 + $0xf0] sm:$0xff]  ;;  %v1598_v37 = vld [vmem:[%s2519_s6 + $0x140] sm:$0xff] }
  0x2f   :  { %234 = vmatmul.f32.gmra.mxu0 %v1865_v12  ;;  %617 = vmatpush.msrb.mxu3 %v1589_v5  ;;  %v1604_v11 = vld [vmem:[%s2519_s6 + $0x170] sm:$0xff]  ;;  %v546_v56 = vld [vmem:[%s2519_s6 + $0x18] sm:$0xff] }
  0x30   :  { %275 = vmatmul.f32.gmra.mxu1 %v1867_v13  ;;  %456 = vmatpush.msrb.mxu0 %v433_v14  ;;  %v556_v14 = vld [vmem:[%s2519_s6 + $0x68] sm:$0xff]  ;;  %v1580_v46 = vld [vmem:[%s2519_s6 + $0xb0] sm:$0xff]  ;;  %v1577_v57 = vld [vmem:[%s2519_s6 + $0x98] sm:$0xff] }
  0x31   :  { %349 = vmatmul.f32.gmra.mxu2 %v1865_v12  ;;  %390 = vmatmul.f32.gmra.mxu3 %v1867_v13  ;;  %v1596_v47 = vld [vmem:[%s2519_s6 + $0x130] sm:$0xff]  ;;  %v1593_v60 = vld [vmem:[%s2519_s6 + $0x118] sm:$0xff] }
  0x32   :  { %497 = vmatpush.msrb.mxu1 %v449_v15  ;;  %457 = vmatpush.msrb.mxu0 %v432_v18  ;;  %v1587_v15 = vld [vmem:[%s2519_s6 + $0xe8] sm:$0xff]  ;;  %v1586_v18 = vld [vmem:[%s2519_s6 + $0xe0] sm:$0xff]  ;;  %v545_v5 = vld [vmem:[%s2519_s6 + $0x10] sm:$0xff] }
  0x33   :  { %560 = vmatpush.msrb.mxu2 %v557_v9  ;;  %618 = vmatpush.msrb.mxu3 %v1588_v10  ;;  %v1592_v9 = vld [vmem:[%s2519_s6 + $0x110] sm:$0xff]  ;;  %v544_v10 = vld [vmem:[%s2519_s6 + $0x8] sm:$0xff] }
  0x34   :  { %498 = vmatpush.msrb.mxu1 %v448_v19  ;;  %458 = vmatpush.msrb.mxu0 %v431_v20  ;;  %v1602_v19 = vld [vmem:[%s2519_s6 + $0x160] sm:$0xff]  ;;  %v554_v20 = vld [vmem:[%s2519_s6 + $0x58] sm:$0xff] }
  0x35   :  { %561 = vmatpush.msrb.mxu2 %v556_v14  ;;  %619 = vmatpush.msrb.mxu3 %v1587_v15  ;;  %v1591_v14 = vld [vmem:[%s2519_s6 + $0x108] sm:$0xff]  ;;  %v543_v15 = vld [vmem:[%s2519_s6] sm:$0xff] }
  0x36   :  { %499 = vmatpush.msrb.mxu1 %v447_v21  ;;  %459 = vmatpush.msrb.mxu0 %v430_v24  ;;  %v1585_v21 = vld [vmem:[%s2519_s6 + $0xd8] sm:$0xff] }
  0x37   :  { %237 = vmatmul.f32.gmra.mxu0 %v1879_v22  ;;  %562 = vmatpush.msrb.mxu2 %v555_v17  ;;  %v1601_v24 = vld [vmem:[%s2519_s6 + $0x158] sm:$0xff]  ;;  %v1590_v17 = vld [vmem:[%s2519_s6 + $0x100] sm:$0xff] }
  0x38   :  { %278 = vmatmul.f32.gmra.mxu1 %v1881_v23  ;;  %460 = vmatpush.msrb.mxu0 %v429_v28  ;;  %v1584_v28 = vld [vmem:[%s2519_s6 + $0xd0] sm:$0xff] }
  0x39   :  { %352 = vmatmul.f32.gmra.mxu2 %v1879_v22  ;;  %393 = vmatmul.f32.gmra.mxu3 %v1881_v23 }
  0x3a   :  { %500 = vmatpush.msrb.mxu1 %v446_v25  ;;  %461 = vmatpush.msrb.mxu0 %v428_v30  ;;  %v552_v30 = vld [vmem:[%s2519_s6 + $0x48] sm:$0xff] }
  0x3b   :  { %620 = vmatpush.msrb.mxu3 %v1586_v18  ;;  %563 = vmatpush.msrb.mxu2 %v554_v20 }
  0x3c   :  { %501 = vmatpush.msrb.mxu1 %v445_v29  ;;  %462 = vmatpush.msrb.mxu0 %v427_v34  ;;  %v1600_v29 = vld [vmem:[%s2519_s6 + $0x150] sm:$0xff]  ;;  %v1599_v34 = vld [vmem:[%s2519_s6 + $0x148] sm:$0xff] }
  0x3d   :  { %621 = vmatpush.msrb.mxu3 %v1585_v21  ;;  %564 = vmatpush.msrb.mxu2 %v553_v27 }
  0x3e   :  { %502 = vmatpush.msrb.mxu1 %v444_v31  ;;  %463 = vmatpush.msrb.mxu0 %v426_v38  ;;  %v1583_v31 = vld [vmem:[%s2519_s6 + $0xc8] sm:$0xff]  ;;  %v550_v38 = vld [vmem:[%s2519_s6 + $0x38] sm:$0xff] }
  0x3f   :  { %240 = vmatmul.f32.gmra.mxu0 %v1893_v32  ;;  %622 = vmatpush.msrb.mxu3 %v1584_v28 }
  0x40   :  { %281 = vmatmul.f32.gmra.mxu1 %v1895_v33  ;;  %464 = vmatpush.msrb.mxu0 %v425_v40  ;;  %v1597_v40 = vld [vmem:[%s2519_s6 + $0x138] sm:$0xff] }
  0x41   :  { %355 = vmatmul.f32.gmra.mxu2 %v1893_v32  ;;  %396 = vmatmul.f32.gmra.mxu3 %v1895_v33 }
  0x42   :  { %503 = vmatpush.msrb.mxu1 %v443_v35  ;;  %465 = vmatpush.msrb.mxu0 %v424_v44  ;;  %v551_v35 = vld [vmem:[%s2519_s6 + $0x40] sm:$0xff] }
  0x43   :  { %565 = vmatpush.msrb.mxu2 %v552_v30  ;;  %623 = vmatpush.msrb.mxu3 %v1583_v31 }
  0x44   :  { %504 = vmatpush.msrb.mxu1 %v442_v39  ;;  %466 = vmatpush.msrb.mxu0 %v423_v48  ;;  %v1581_v39 = vld [vmem:[%s2519_s6 + $0xb8] sm:$0xff]  ;;  %v548_v48 = vld [vmem:[%s2519_s6 + $0x28] sm:$0xff] }
  0x45   :  { %566 = vmatpush.msrb.mxu2 %v551_v35  ;;  %624 = vmatpush.msrb.mxu3 %v1582_v36 }
  0x46   :  { %505 = vmatpush.msrb.mxu1 %v441_v41  ;;  %467 = vmatpush.msrb.mxu0 %v422_v50  ;;  %v1595_v50 = vld [vmem:[%s2519_s6 + $0x128] sm:$0xff] }
  0x47   :  { %243 = vmatmul.f32.gmra.mxu0 %v1907_v42  ;;  %567 = vmatpush.msrb.mxu2 %v550_v38 }
  0x48   :  { %284 = vmatmul.f32.gmra.mxu1 %v1909_v43  ;;  %468 = vmatpush.msrb.mxu0 %v421_v54  ;;  %v1578_v54 = vld [vmem:[%s2519_s6 + $0xa0] sm:$0xff] }
  0x49   :  { %358 = vmatmul.f32.gmra.mxu2 %v1907_v42  ;;  %399 = vmatmul.f32.gmra.mxu3 %v1909_v43 }
  0x4a   :  { %506 = vmatpush.msrb.mxu1 %v440_v45  ;;  %683 = vmatpush.msra.mxu0 %v1605_v6  ;;  %v549_v45 = vld [vmem:[%s2519_s6 + $0x30] sm:$0xff] }
  0x4b   :  { %625 = vmatpush.msrb.mxu3 %v1581_v39  ;;  %568 = vmatpush.msrb.mxu2 %v549_v45  ;;  %v1576_v6 = vld [vmem:[%s2519_s6 + $0x90] sm:$0xff] }
  0x4c   :  { %507 = vmatpush.msrb.mxu1 %v439_v49  ;;  %684 = vmatpush.msra.mxu0 %v1604_v11  ;;  %v1579_v49 = vld [vmem:[%s2519_s6 + $0xa8] sm:$0xff] }
  0x4d   :  { %626 = vmatpush.msrb.mxu3 %v1580_v46  ;;  %569 = vmatpush.msrb.mxu2 %v548_v48  ;;  %v1575_v11 = vld [vmem:[%s2519_s6 + $0x88] sm:$0xff] }
  0x4e   :  { %508 = vmatpush.msrb.mxu1 %v438_v51  ;;  %685 = vmatpush.msra.mxu0 %v1603_v16  ;;  %v547_v51 = vld [vmem:[%s2519_s6 + $0x20] sm:$0xff] }
  0x4f   :  { %246 = vmatmul.f32.gmra.mxu0 %v1921_v52  ;;  %627 = vmatpush.msrb.mxu3 %v1579_v49  ;;  %v1574_v16 = vld [vmem:[%s2519_s6 + $0x80] sm:$0xff] }
  0x50   :  { %287 = vmatmul.f32.gmra.mxu1 %v1923_v53  ;;  %686 = vmatpush.msra.mxu0 %v1602_v19 }
  0x51   :  { %361 = vmatmul.f32.gmra.mxu2 %v1921_v52  ;;  %402 = vmatmul.f32.gmra.mxu3 %v1923_v53 }
  0x52   :  { %509 = vmatpush.msrb.mxu1 %v437_v55  ;;  %687 = vmatpush.msra.mxu0 %v1601_v24  ;;  %v1594_v55 = vld [vmem:[%s2519_s6 + $0x120] sm:$0xff] }
  0x53   :  { %570 = vmatpush.msrb.mxu2 %v547_v51  ;;  %628 = vmatpush.msrb.mxu3 %v1578_v54 }
  0x54   :  { %688 = vmatpush.msra.mxu0 %v1600_v29 }
  0x55   :  { %571 = vmatpush.msrb.mxu2 %v546_v56  ;;  %629 = vmatpush.msrb.mxu3 %v1577_v57 }
  0x56   :  { %689 = vmatpush.msra.mxu0 %v1599_v34 }
  0x57   :  { %249 = vmatmul.f32.gmra.mxu0 %v1935_v58  ;;  %572 = vmatpush.msrb.mxu2 %v545_v5 }
  0x58   :  { %290 = vmatmul.f32.gmra.mxu1 %v1937_v59  ;;  %690 = vmatpush.msra.mxu0 %v1598_v37 }
  0x59   :  { %364 = vmatmul.f32.gmra.mxu2 %v1935_v58  ;;  %405 = vmatmul.f32.gmra.mxu3 %v1937_v59 }
  0x5a   :  { %691 = vmatpush.msra.mxu0 %v1597_v40  ;;  %630 = vmatpush.msrb.mxu3 %v1576_v6 }
  0x5b   :  { %573 = vmatpush.msrb.mxu2 %v544_v10 }
  0x5c   :  { %692 = vmatpush.msra.mxu0 %v1596_v47  ;;  %631 = vmatpush.msrb.mxu3 %v1575_v11 }
  0x5d   :  { %574 = vmatpush.msrb.mxu2 %v543_v15 }
  0x5e   :  { %693 = vmatpush.msra.mxu0 %v1595_v50  ;;  %632 = vmatpush.msrb.mxu3 %v1574_v16 }
  0x5f   :  { %252 = vmatmul.f32.gmra.mxu0 %v1949_v62 }
  0x60   :  { %293 = vmatmul.f32.gmra.mxu1 %v1951_v63  ;;  %694 = vmatpush.msra.mxu0 %v1594_v55 }
  0x61   :  { %367 = vmatmul.f32.gmra.mxu2 %v1949_v62  ;;  %408 = vmatmul.f32.gmra.mxu3 %v1951_v63 }
  0x62   :  { %695 = vmatpush.msra.mxu0 %v1593_v60 }
  0x64   :  { %696 = vmatpush.msra.mxu0 %v1592_v9 }
  0x66   :  { %697 = vmatpush.msra.mxu0 %v1591_v14 }
  0x67   :  { %469 = vmatmul.f32.vlgmr.msrb.gmra.mxu0 %v1851_v2 }
  0x68   :  { %510 = vmatmul.f32.vlgmr.msrb.gmra.mxu1 %v1853_v3  ;;  %698 = vmatpush.msra.mxu0 %v1590_v17 }
  0x6f   :  { %472 = vmatmul.f32.gmra.mxu0 %v1865_v12 }
  0x70   :  { %513 = vmatmul.f32.gmra.mxu1 %v1867_v13 }
  0x77   :  { %475 = vmatmul.f32.gmra.mxu0 %v1879_v22 }
  0x78   :  { %516 = vmatmul.f32.gmra.mxu1 %v1881_v23 }
  0x7f   :  { %478 = vmatmul.f32.gmra.mxu0 %v1893_v32 }
  0x80   :  { %519 = vmatmul.f32.gmra.mxu1 %v1895_v33 }
  0x87   :  { %481 = vmatmul.f32.gmra.mxu0 %v1907_v42 }
  0x88   :  { %522 = vmatmul.f32.gmra.mxu1 %v1909_v43 }
  0x8f   :  { %484 = vmatmul.f32.gmra.mxu0 %v1921_v52 }
  0x90   :  { %525 = vmatmul.f32.gmra.mxu1 %v1923_v53 }
  0x97   :  { %487 = vmatmul.f32.gmra.mxu0 %v1935_v58 }
  0x98   :  { %528 = vmatmul.f32.gmra.mxu1 %v1937_v59 }
  0x9f   :  { %490 = vmatmul.f32.gmra.mxu0 %v1949_v62 }
  0xa0   :  { %531 = vmatmul.f32.gmra.mxu1 %v1951_v63 }
  0xa4   :  { %v1973_v0 = vpop.f32.mrf.mxu0 }
  0xa5   :  { %v1975_v1 = vpop.f32.mrf.mxu1 }
  0xa6   :  { %v274_v35 = vadd.f32 %v1975_v1, %v1973_v0 }
  0xac   :  { %v1986_v7 = vpop.f32.mrf.mxu0  ;;  %v347_v20 = vpop.f32.mrf.mxu2 }
  0xad   :  { %v1988_v8 = vpop.f32.mrf.mxu1  ;;  %v388_v21 = vpop.f32.mrf.mxu3 }
  0xae   :  { %v389_v34 = vadd.f32 %v388_v21, %v347_v20  ;;  %v277_v48 = vadd.f32 %v1988_v8, %v1986_v7 }
  0xb0   :  { %v412_v40 = vmax.f32 %v274_v35, %v389_v34 }
  0xb4   :  { %v2026_v25 = vpop.f32.mrf.mxu0  ;;  %v350_v28 = vpop.f32.mrf.mxu2 }
  0xb5   :  { %v2028_v26 = vpop.f32.mrf.mxu1  ;;  %v391_v29 = vpop.f32.mrf.mxu3 }
  0xb6   :  { %v392_v47 = vadd.f32 %v391_v29, %v350_v28  ;;  %v280_v57 = vadd.f32 %v2028_v26, %v2026_v25 }
  0xb8   :  { %v413_v51 = vmax.f32 %v277_v48, %v392_v47 }
  0xbc   :  { %v2066_v41 = vpop.f32.mrf.mxu0  ;;  %v353_v36 = vpop.f32.mrf.mxu2 }
  0xbd   :  { %v2068_v44 = vpop.f32.mrf.mxu1  ;;  %v394_v37 = vpop.f32.mrf.mxu3 }
  0xbe   :  { %v395_v56 = vadd.f32 %v394_v37, %v353_v36  ;;  %v283_v14 = vadd.f32 %v2068_v44, %v2066_v41 }
  0xc0   :  { %v414_v6 = vmax.f32 %v280_v57, %v395_v56 }
  0xc4   :  { %v2106_v61 = vpop.f32.mrf.mxu0  ;;  %v356_v54 = vpop.f32.mrf.mxu2 }
  0xc5   :  { %v2108_v4 = vpop.f32.mrf.mxu1  ;;  %v397_v55 = vpop.f32.mrf.mxu3 }
  0xc6   :  { %v398_v11 = vadd.f32 %v397_v55, %v356_v54  ;;  %v286_v29 = vadd.f32 %v2108_v4, %v2106_v61 }
  0xc8   :  { %v415_v17 = vmax.f32 %v283_v14, %v398_v11 }
  0xcc   :  { %v2137_v18 = vpop.f32.mrf.mxu0  ;;  %v359_v10 = vpop.f32.mrf.mxu2 }
  0xcd   :  { %v2139_v19 = vpop.f32.mrf.mxu1  ;;  %v400_v7 = vpop.f32.mrf.mxu3 }
  0xce   :  { %v401_v25 = vadd.f32 %v400_v7, %v359_v10  ;;  %v289_v44 = vadd.f32 %v2139_v19, %v2137_v18 }
  0xd0   :  { %v416_v36 = vmax.f32 %v286_v29, %v401_v25 }
  0xd4   :  { %v2141_v24 = vpop.f32.mrf.mxu0  ;;  %v362_v26 = vpop.f32.mrf.mxu2 }
  0xd5   :  { %v2143_v27 = vpop.f32.mrf.mxu1  ;;  %v403_v28 = vpop.f32.mrf.mxu3 }
  0xd6   :  { %v404_v41 = vadd.f32 %v403_v28, %v362_v26  ;;  %v292_v4 = vadd.f32 %v2143_v27, %v2141_v24 }
  0xd8   :  { %v417_v47 = vmax.f32 %v289_v44, %v404_v41 }
  0xdc   :  { %v2145_v30 = vpop.f32.mrf.mxu0 }
  0xdd   :  { %v2147_v31 = vpop.f32.mrf.mxu1 }
  0xde   :  { %v295_v56 = vadd.f32 %v2147_v31, %v2145_v30 }
  0xe4   :  { %v470_v38 = vpop.f32.mrf.mxu0 }
  0xe5   :  { %v511_v39 = vpop.f32.mrf.mxu1 }
  0xe6   :  { %v512_v45 = vadd.f32 %v511_v39, %v470_v38  ;;  %v365_v39 = vpop.f32.mrf.mxu2 }
  0xe8   :  { %v535_v46 = vmax.f32 %v412_v40, %v512_v45  ;;  %v406_v40 = vpop.f32.mrf.mxu3 }
  0xe9   :  { %v407_v61 = vadd.f32 %v406_v40, %v365_v39 }
  0xea   :  { %575 = vmatmul.f32.vlgmr.msrb.gmra.mxu2 %v535_v46  ;;  %633 = vmatmul.f32.vlgmr.msrb.gmra.mxu3 %v535_v46 }
  0xeb   :  { %699 = vmatmul.f32.vlgmr.msra.gmra.mxu0 %v535_v46  ;;  %v418_v54 = vmax.f32 %v292_v4, %v407_v61 }
  0xec   :  { %v473_v49 = vpop.f32.mrf.mxu0 }
  0xed   :  { %v514_v50 = vpop.f32.mrf.mxu1 }
  0xee   :  { %v515_v0 = vadd.f32 %v514_v50, %v473_v49 }
  0xf0   :  { %v536_v1 = vmax.f32 %v413_v51, %v515_v0  ;;  %v368_v0 = vpop.f32.mrf.mxu2  ;;  %v409_v18 = vpop.f32.mrf.mxu3 }
  0xf2   :  { %578 = vmatmul.f32.gmra.mxu2 %v536_v1  ;;  %636 = vmatmul.f32.gmra.mxu3 %v536_v1 }
  0xf3   :  { %702 = vmatmul.f32.gmra.mxu0 %v536_v1  ;;  %v410_v1 = vadd.f32 %v409_v18, %v368_v0 }
  0xf4   :  { %v476_v60 = vpop.f32.mrf.mxu0 }
  0xf5   :  { %v517_v5 = vpop.f32.mrf.mxu1 }
  0xf6   :  { %v518_v9 = vadd.f32 %v517_v5, %v476_v60  ;;  %v419_v5 = vmax.f32 %v295_v56, %v410_v1  ;;  %v1618_v1 = vld [vmem:[%s2520_s7 + $0x40] sm:$0xff] }
  0xf7   :  { %v732_v56 = vld [vmem:[%s2520_s7] sm:$0xff] }
  0xf8   :  { %v537_v8 = vmax.f32 %v414_v6, %v518_v9 }
  0xfa   :  { %581 = vmatmul.f32.gmra.mxu2 %v537_v8  ;;  %639 = vmatmul.f32.gmra.mxu3 %v537_v8 }
  0xfb   :  { %705 = vmatmul.f32.gmra.mxu0 %v537_v8 }
  0xfc   :  { %v479_v15 = vpop.f32.mrf.mxu0 }
  0xfd   :  { %v520_v16 = vpop.f32.mrf.mxu1 }
  0xfe   :  { %v521_v20 = vadd.f32 %v520_v16, %v479_v15 }
 0x100   :  { %v538_v21 = vmax.f32 %v415_v17, %v521_v20 }
 0x102   :  { %584 = vmatmul.f32.gmra.mxu2 %v538_v21  ;;  %642 = vmatmul.f32.gmra.mxu3 %v538_v21 }
 0x103   :  { %708 = vmatmul.f32.gmra.mxu0 %v538_v21 }
 0x104   :  { %v482_v34 = vpop.f32.mrf.mxu0 }
 0x105   :  { %v523_v35 = vpop.f32.mrf.mxu1 }
 0x106   :  { %v524_v37 = vadd.f32 %v523_v35, %v482_v34 }
 0x108   :  { %v539_v38 = vmax.f32 %v416_v36, %v524_v37 }
 0x10a   :  { %587 = vmatmul.f32.gmra.mxu2 %v539_v38  ;;  %645 = vmatmul.f32.gmra.mxu3 %v539_v38 }
 0x10b   :  { %711 = vmatmul.f32.gmra.mxu0 %v539_v38 }
 0x10c   :  { %v485_v45 = vpop.f32.mrf.mxu0 }
 0x10d   :  { %v526_v46 = vpop.f32.mrf.mxu1 }
 0x10e   :  { %v527_v48 = vadd.f32 %v526_v46, %v485_v45 }
 0x110   :  { %v540_v49 = vmax.f32 %v417_v47, %v527_v48 }
 0x112   :  { %590 = vmatmul.f32.gmra.mxu2 %v540_v49  ;;  %648 = vmatmul.f32.gmra.mxu3 %v540_v49 }
 0x113   :  { %714 = vmatmul.f32.gmra.mxu0 %v540_v49 }
 0x114   :  { %v488_v50 = vpop.f32.mrf.mxu0 }
 0x115   :  { %v529_v51 = vpop.f32.mrf.mxu1 }
 0x116   :  { %v530_v55 = vadd.f32 %v529_v51, %v488_v50 }
 0x118   :  { %v541_v19 = vmax.f32 %v418_v54, %v530_v55 }
 0x11a   :  { %593 = vmatmul.f32.gmra.mxu2 %v541_v19  ;;  %651 = vmatmul.f32.gmra.mxu3 %v541_v19 }
 0x11b   :  { %717 = vmatmul.f32.gmra.mxu0 %v541_v19  ;;  %v1610_v19 = vld [vmem:[%s2520_s7 + $0x20] sm:$0xff] }
 0x11c   :  { %v491_v57 = vpop.f32.mrf.mxu0 }
 0x11d   :  { %v532_v60 = vpop.f32.mrf.mxu1 }
 0x11e   :  { %v533_v6 = vadd.f32 %v532_v60, %v491_v57  ;;  %v1637_v57 = vld [vmem:[%s2521_s8 + $0x78] sm:$0xff] }
 0x11f   :  { %v1649_v60 = vld [vmem:[%s2521_s8 + $0xb8] sm:$0xff] }
 0x120   :  { %v542_v9 = vmax.f32 %v419_v5, %v533_v6  ;;  %v920_v5 = vld [vmem:[%s2521_s8 + $0x38] sm:$0xff]  ;;  %v1636_v6 = vld [vmem:[%s2521_s8 + $0x70] sm:$0xff] }
 0x122   :  { %596 = vmatmul.f32.gmra.mxu2 %v542_v9  ;;  %654 = vmatmul.f32.gmra.mxu3 %v542_v9 }
 0x123   :  { %720 = vmatmul.f32.gmra.mxu0 %v542_v9  ;;  %v1648_v9 = vld [vmem:[%s2521_s8 + $0xb0] sm:$0xff] }
 0x168   :  { %v700_v24 = vpop.f32.mrf.mxu0 }
 0x16d   :  { %v576_v27 = vpop.f32.mrf.mxu2  ;;  %v634_v10 = vpop.f32.mrf.mxu3 }
 0x16e   :  { %v658_v7 = vmax.f32 %v576_v27, %v634_v10  ;;  %v1635_v27 = vld [vmem:[%s2521_s8 + $0x68] sm:$0xff] }
 0x16f   :  { %v1647_v10 = vld [vmem:[%s2521_s8 + $0xa8] sm:$0xff] }
 0x170   :  { %v2165_v8 = vmax.f32 %v658_v7, %v700_v24  ;;  %v703_v11 = vpop.f32.mrf.mxu0  ;;  %v919_v24 = vld [vmem:[%s2521_s8 + $0x30] sm:$0xff]  ;;  %v1611_v7 = vld [vmem:[%s2520_s7 + $0x28] sm:$0xff] }
 0x175   :  { %v579_v14 = vpop.f32.mrf.mxu2  ;;  %v637_v15 = vpop.f32.mrf.mxu3 }
 0x176   :  { %v659_v54 = vmax.f32 %v579_v14, %v637_v15  ;;  %v733_v14 = vld [vmem:[%s2520_s7 + $0x8] sm:$0xff]  ;;  %v1634_v15 = vld [vmem:[%s2521_s8 + $0x60] sm:$0xff] }
 0x178   :  { %v706_v16 = vpop.f32.mrf.mxu0  ;;  %v725_v18 = vmax.f32 %v659_v54, %v703_v11  ;;  %v1619_v11 = vld [vmem:[%s2520_s7 + $0x48] sm:$0xff] }
 0x17d   :  { %v582_v17 = vpop.f32.mrf.mxu2  ;;  %v640_v30 = vpop.f32.mrf.mxu3 }
 0x17e   :  { %v660_v50 = vmax.f32 %v582_v17, %v640_v30  ;;  %v1612_v17 = vld [vmem:[%s2520_s7 + $0x30] sm:$0xff] }
 0x17f   :  { %v1620_v30 = vld [vmem:[%s2520_s7 + $0x50] sm:$0xff] }
 0x180   :  { %v709_v31 = vpop.f32.mrf.mxu0  ;;  %v726_v0 = vmax.f32 %v660_v50, %v706_v16  ;;  %v1633_v16 = vld [vmem:[%s2521_s8 + $0x58] sm:$0xff] }
 0x181   :  { %v916_v50 = vld [vmem:[%s2521_s8 + $0x18] sm:$0xff] }
 0x185   :  { %v585_v20 = vpop.f32.mrf.mxu2  ;;  %v643_v21 = vpop.f32.mrf.mxu3 }
 0x186   :  { %v661_v61 = vmax.f32 %v585_v20, %v643_v21  ;;  %v1613_v20 = vld [vmem:[%s2520_s7 + $0x38] sm:$0xff] }
 0x187   :  { %v1621_v21 = vld [vmem:[%s2520_s7 + $0x58] sm:$0xff] }
 0x188   :  { %v712_v25 = vpop.f32.mrf.mxu0  ;;  %v727_v55 = vmax.f32 %v661_v61, %v709_v31  ;;  %v734_v31 = vld [vmem:[%s2520_s7 + $0x10] sm:$0xff]  ;;  %v99_v61 = vld [vmem:[%s2514_s1 + $0x18] sm:$0xff] }
 0x18d   :  { %v588_v26 = vpop.f32.mrf.mxu2  ;;  %v646_v28 = vpop.f32.mrf.mxu3 }
 0x18e   :  { %v662_v48 = vmax.f32 %v588_v26, %v646_v28  ;;  %v100_v26 = vld [vmem:[%s2514_s1 + $0x20] sm:$0xff]  ;;  %v101_v28 = vld [vmem:[%s2514_s1 + $0x28] sm:$0xff] }
 0x190   :  { %v715_v29 = vpop.f32.mrf.mxu0  ;;  %v728_v51 = vmax.f32 %v662_v48, %v712_v25  ;;  %v735_v25 = vld [vmem:[%s2520_s7 + $0x18] sm:$0xff] }
 0x195   :  { %v591_v34 = vpop.f32.mrf.mxu2  ;;  %v649_v35 = vpop.f32.mrf.mxu3 }
 0x196   :  { %v663_v46 = vmax.f32 %v591_v34, %v649_v35  ;;  %v116_v34 = vsub.f32 %v100_v26, %v1879_v22  ;;  %v117_v35 = vsub.f32 %v101_v28, %v1881_v23  ;;  %v917_v23 = vld [vmem:[%s2521_s8 + $0x20] sm:$0xff] }
 0x198   :  { %v718_v36 = vpop.f32.mrf.mxu0  ;;  %v729_v4 = vmax.f32 %v663_v46, %v715_v29  ;;  %v96_v29 = vld [vmem:[%s2514_s1] sm:$0xff]  ;;  %v918_v46 = vld [vmem:[%s2521_s8 + $0x28] sm:$0xff] }
 0x19d   :  { %v594_v37 = vpop.f32.mrf.mxu2  ;;  %v652_v38 = vpop.f32.mrf.mxu3 }
 0x19e   :  { %v664_v39 = vmax.f32 %v594_v37, %v652_v38  ;;  %v112_v37 = vsub.f32 %v96_v29, %v1851_v2  ;;  %v102_v2 = vld [vmem:[%s2514_s1 + $0x30] sm:$0xff]  ;;  %v108_v29 = vld [vmem:[%s2514_s1 + $0x60] sm:$0xff] }
 0x1a0   :  { %v721_v45 = vpop.f32.mrf.mxu0  ;;  %v730_v49 = vmax.f32 %v664_v39, %v718_v36  ;;  %v97_v36 = vld [vmem:[%s2514_s1 + $0x8] sm:$0xff]  ;;  %v128_v39 = vmul.f32 %v112_v37, %v112_v37 }
 0x1a1   :  { %v113_v38 = vsub.f32 %v97_v36, %v1853_v3  ;;  %v103_v3 = vld [vmem:[%s2514_s1 + $0x38] sm:$0xff] }
 0x1a2   :  { %v119_v48 = vsub.f32 %v103_v3, %v1895_v33  ;;  %v115_v33 = vsub.f32 %v99_v61, %v1867_v13 }
 0x1a4   :  { %v135_v54 = vmul.f32 %v119_v48, %v119_v48 }
 0x1a5   :  { %v597_v41 = vpop.f32.mrf.mxu2  ;;  %v655_v44 = vpop.f32.mrf.mxu3 }
 0x1a6   :  { %v665_v40 = vmax.f32 %v597_v41, %v655_v44  ;;  %v132_v41 = vmul.f32 %v116_v34, %v116_v34  ;;  %v133_v44 = vmul.f32 %v117_v35, %v117_v35  ;;  %v109_v34 = vld [vmem:[%s2514_s1 + $0x68] sm:$0xff]  ;;  %v124_v35 = vsub.f32 %v108_v29, %v1935_v58 }
 0x1a7   :  { %v125_v36 = vsub.f32 %v109_v34, %v1937_v59 }
 0x1a8   :  { %v731_v47 = vmax.f32 %v665_v40, %v721_v45  ;;  %v129_v40 = vmul.f32 %v113_v38, %v113_v38  ;;  %v150_v45 = vadd.f32 %v133_v44, %v132_v41  ;;  %v140_v37 = vmul.f32 %v124_v35, %v124_v35 }
 0x1aa   :  { %757 = vmatpush.msra.mxu1 %v731_v47  ;;  %803 = vmatpush.msra.mxu2 %v731_v47  ;;  %v144_v22 = vadd.f32 %v129_v40, %v128_v39  ;;  %v878_v40 = vld [vmem:[%s2515_s2] sm:$0xff] }
 0x1ab   :  { %853 = vmatpush.msra.mxu3 %v731_v47  ;;  %151 = vadd.xlane.f32.xlu1 %v150_v45  ;;  %v118_v47 = vsub.f32 %v102_v2, %v1893_v32 }
 0x1ac   :  { %758 = vmatpush.msra.mxu1 %v730_v49  ;;  %804 = vmatpush.msra.mxu2 %v730_v49 }
 0x1ad   :  { %854 = vmatpush.msra.mxu3 %v730_v49  ;;  %145 = vadd.xlane.f32.xlu0 %v144_v22  ;;  %v98_v49 = vld [vmem:[%s2514_s1 + $0x10] sm:$0xff] }
 0x1ae   :  { %759 = vmatpush.msra.mxu1 %v729_v4  ;;  %805 = vmatpush.msra.mxu2 %v729_v4  ;;  %v114_v32 = vsub.f32 %v98_v49, %v1865_v12  ;;  %v131_v12 = vmul.f32 %v115_v33, %v115_v33 }
 0x1af   :  { %855 = vmatpush.msra.mxu3 %v729_v4  ;;  %v1645_v4 = vld [vmem:[%s2521_s8 + $0x98] sm:$0xff] }
 0x1b0   :  { %760 = vmatpush.msra.mxu1 %v728_v51  ;;  %806 = vmatpush.msra.mxu2 %v728_v51 }
 0x1b1   :  { %856 = vmatpush.msra.mxu3 %v728_v51  ;;  %v134_v51 = vmul.f32 %v118_v47, %v118_v47  ;;  %v879_v47 = vld [vmem:[%s2515_s2 + $0x8] sm:$0xff] }
 0x1b2   :  { %761 = vmatpush.msra.mxu1 %v727_v55  ;;  %807 = vmatpush.msra.mxu2 %v727_v55 }
 0x1b3   :  { %857 = vmatpush.msra.mxu3 %v727_v55  ;;  %v1632_v55 = vld [vmem:[%s2521_s8 + $0x50] sm:$0xff]  ;;  %v153_v13 = vadd.f32 %v135_v54, %v134_v51 }
 0x1b4   :  { %762 = vmatpush.msra.mxu1 %v726_v0  ;;  %808 = vmatpush.msra.mxu2 %v726_v0  ;;  %v880_v54 = vld [vmem:[%s2515_s2 + $0x10] sm:$0xff] }
 0x1b5   :  { %858 = vmatpush.msra.mxu3 %v726_v0  ;;  %v1644_v0 = vld [vmem:[%s2521_s8 + $0x90] sm:$0xff]  ;;  %154 = vadd.xlane.f32.xlu1 %v153_v13 }
 0x1b6   :  { %763 = vmatpush.msra.mxu1 %v725_v18  ;;  %809 = vmatpush.msra.mxu2 %v725_v18 }
 0x1b7   :  { %859 = vmatpush.msra.mxu3 %v725_v18  ;;  %v915_v18 = vld [vmem:[%s2521_s8 + $0x10] sm:$0xff] }
 0x1b8   :  { %764 = vmatpush.msra.mxu1 %v2165_v8  ;;  %810 = vmatpush.msra.mxu2 %v2165_v8 }
 0x1b9   :  { %860 = vmatpush.msra.mxu3 %v2165_v8  ;;  %1614 = vmatmul.msk.f32.vlgmr.msra.gmra.mxu2 %vm736_vm0, %v1610_v19  ;;  %v1646_v8 = vld [vmem:[%s2521_s8 + $0xa0] sm:$0xff]  ;;  %v130_v19 = vmul.f32 %v114_v32, %v114_v32 }
 0x1ba   :  { %1622 = vmatmul.msk.f32.vlgmr.msra.gmra.mxu3 %vm736_vm0, %v1618_v1  ;;  %1606 = vmatmul.msk.f32.vlgmr.msra.gmra.mxu1 %vm736_vm0, %v732_v56  ;;  %v1631_v1 = vld [vmem:[%s2521_s8 + $0x48] sm:$0xff] }
 0x1bb   :  { %979 = vmatpush.msrb.mxu2 %v1637_v57  ;;  %1021 = vmatpush.msrb.mxu3 %v1649_v60  ;;  %v1643_v56 = vld [vmem:[%s2521_s8 + $0x88] sm:$0xff]  ;;  %v147_v60 = vadd.f32 %v131_v12, %v130_v19 }
 0x1bc   :  { %941 = vmatpush.msrb.mxu1 %v920_v5  ;;  %v914_v57 = vld [vmem:[%s2521_s8 + $0x8] sm:$0xff]  ;;  %v1630_v5 = vld [vmem:[%s2521_s8 + $0x40] sm:$0xff] }
 0x1bd   :  { %980 = vmatpush.msrb.mxu2 %v1636_v6  ;;  %1022 = vmatpush.msrb.mxu3 %v1648_v9  ;;  %v1642_v6 = vld [vmem:[%s2521_s8 + $0x80] sm:$0xff] }
 0x1be   :  { %942 = vmatpush.msrb.mxu1 %v919_v24  ;;  %v104_v9 = vld [vmem:[%s2514_s1 + $0x40] sm:$0xff]  ;;  %v105_v24 = vld [vmem:[%s2514_s1 + $0x48] sm:$0xff]  ;;  %148 = vadd.xlane.f32.xlu0 %v147_v60 }
 0x1bf   :  { %981 = vmatpush.msrb.mxu2 %v1635_v27  ;;  %1023 = vmatpush.msrb.mxu3 %v1647_v10  ;;  %v120_v27 = vsub.f32 %v104_v9, %v1907_v42  ;;  %v121_v10 = vsub.f32 %v105_v24, %v1909_v43  ;;  %v1049_v24 = vld [vmem:[%s2522_s9 + $0x18] sm:$0xff] }
 0x1c0   :  { %943 = vmatpush.msrb.mxu1 %v918_v46  ;;  %1075 = vmatpush.msrb.mxu0 %v1049_v24 }
 0x1c1   :  { %1615 = vmatmul.msk.f32.gmra.mxu2 %vm736_vm0, %v1611_v7  ;;  %1024 = vmatpush.msrb.mxu3 %v1646_v8  ;;  %v913_v7 = vld [vmem:[%s2521_s8] sm:$0xff]  ;;  %v110_v8 = vld [vmem:[%s2514_s1 + $0x70] sm:$0xff]  ;;  %v137_v43 = vmul.f32 %v121_v10, %v121_v10  ;;  %v1661_v10 = vld [vmem:[%s2522_s9 + $0x38] sm:$0xff] }
 0x1c2   :  { %1623 = vmatmul.msk.f32.gmra.mxu3 %vm736_vm0, %v1619_v11  ;;  %1607 = vmatmul.msk.f32.gmra.mxu1 %vm736_vm0, %v733_v14  ;;  %v111_v11 = vld [vmem:[%s2514_s1 + $0x78] sm:$0xff]  ;;  %v126_v14 = vsub.f32 %v110_v8, %v1949_v62  ;;  %v1048_v8 = vld [vmem:[%s2522_s9 + $0x10] sm:$0xff] }
 0x1c3   :  { %982 = vmatpush.msrb.mxu2 %v1634_v15  ;;  %944 = vmatpush.msrb.mxu1 %v917_v23  ;;  %v127_v42 = vsub.f32 %v111_v11, %v1951_v63  ;;  %v136_v15 = vmul.f32 %v120_v27, %v120_v27  ;;  %v1669_v27 = vld [vmem:[%s2522_s9 + $0x58] sm:$0xff]  ;;  %v1660_v11 = vld [vmem:[%s2522_s9 + $0x30] sm:$0xff] }
 0x1c4   :  { %1025 = vmatpush.msrb.mxu3 %v1645_v4  ;;  %1076 = vmatpush.msrb.mxu0 %v1048_v8 }
 0x1c5   :  { %983 = vmatpush.msrb.mxu2 %v1633_v16  ;;  %945 = vmatpush.msrb.mxu1 %v916_v50  ;;  %v142_v16 = vmul.f32 %v126_v14, %v126_v14  ;;  %v1667_v14 = vld [vmem:[%s2522_s9 + $0x48] sm:$0xff] }
 0x1c6   :  { %1026 = vmatpush.msrb.mxu3 %v1644_v0 }
 0x1c7   :  { %984 = vmatpush.msrb.mxu2 %v1632_v55  ;;  %946 = vmatpush.msrb.mxu1 %v915_v18 }
 0x1c8   :  { %1027 = vmatpush.msrb.mxu3 %v1643_v56 }
 0x1c9   :  { %1616 = vmatmul.msk.f32.gmra.mxu2 %vm736_vm0, %v1612_v17  ;;  %947 = vmatpush.msrb.mxu1 %v914_v57  ;;  %v143_v17 = vmul.f32 %v127_v42, %v127_v42  ;;  %v881_v57 = vld [vmem:[%s2515_s2 + $0x18] sm:$0xff]  ;;  %v1047_v42 = vld [vmem:[%s2522_s9 + $0x8] sm:$0xff] }
 0x1ca   :  { %1624 = vmatmul.msk.f32.gmra.mxu3 %vm736_vm0, %v1620_v30  ;;  %1608 = vmatmul.msk.f32.gmra.mxu1 %vm736_vm0, %v734_v31  ;;  %v156_v30 = vadd.f32 %v137_v43, %v136_v15  ;;  %v1659_v15 = vld [vmem:[%s2522_s9 + $0x28] sm:$0xff]  ;;  %v1666_v43 = vld [vmem:[%s2522_s9 + $0x40] sm:$0xff] }
 0x1cb   :  { %985 = vmatpush.msrb.mxu2 %v1631_v1  ;;  %1028 = vmatpush.msrb.mxu3 %v1642_v6  ;;  %v165_v31 = vadd.f32 %v143_v17, %v142_v16  ;;  %v1046_v16 = vld [vmem:[%s2522_s9] sm:$0xff] }
 0x1cc   :  { %948 = vmatpush.msrb.mxu1 %v913_v7  ;;  %157 = vadd.xlane.f32.xlu2 %v156_v30  ;;  %v1668_v7 = vld [vmem:[%s2522_s9 + $0x50] sm:$0xff]  ;;  %v1658_v17 = vld [vmem:[%s2522_s9 + $0x20] sm:$0xff] }
 0x1cd   :  { %986 = vmatpush.msrb.mxu2 %v1630_v5  ;;  %166 = vadd.xlane.f32.xlu1 %v165_v31 }
 0x1ce   :  { %1109 = vmatpush.msra.mxu1 %v1661_v10  ;;  %1077 = vmatpush.msrb.mxu0 %v1047_v42 }
 0x1cf   :  { %1147 = vmatpush.msra.mxu2 %v1669_v27 }
 0x1d0   :  { %1110 = vmatpush.msra.mxu1 %v1660_v11  ;;  %1078 = vmatpush.msrb.mxu0 %v1046_v16  ;;  %v1267_v11 = vld [vmem:[%s2516_s3] sm:$0xff] }
 0x1d1   :  { %1617 = vmatmul.msk.f32.gmra.mxu2 %vm736_vm0, %v1613_v20  ;;  %v106_v20 = vld [vmem:[%s2514_s1 + $0x50] sm:$0xff] }
 0x1d2   :  { %1625 = vmatmul.msk.f32.gmra.mxu3 %vm736_vm0, %v1621_v21  ;;  %1609 = vmatmul.msk.f32.gmra.mxu1 %vm736_vm0, %v735_v25  ;;  %v107_v21 = vld [vmem:[%s2514_s1 + $0x58] sm:$0xff]  ;;  %v122_v62 = vsub.f32 %v106_v20, %v1921_v52  ;;  %v141_v52 = vmul.f32 %v125_v36, %v125_v36 }
 0x1d3   :  { %v123_v63 = vsub.f32 %v107_v21, %v1923_v53  ;;  %1148 = vmatpush.msra.mxu2 %v1668_v7  ;;  %1111 = vmatpush.msra.mxu1 %v1659_v15 }
 0x1d4   :  { %v138_v25 = vmul.f32 %v122_v62, %v122_v62  ;;  %v162_v38 = vadd.f32 %v141_v52, %v140_v37 }
 0x1d5   :  { %v139_v26 = vmul.f32 %v123_v63, %v123_v63  ;;  %1149 = vmatpush.msra.mxu2 %v1667_v14  ;;  %1112 = vmatpush.msra.mxu1 %v1658_v17 }
 0x1d7   :  { %v159_v28 = vadd.f32 %v139_v26, %v138_v25  ;;  %1150 = vmatpush.msra.mxu2 %v1666_v43 }
 0x1d9   :  { %160 = vadd.xlane.f32.xlu2 %v159_v28 }
 0x1e1   :  { %163 = vadd.xlane.f32.xlu2 %v162_v38 }
 0x237   :  { %v766_v53 = vpop.f32.mrf.mxu1 }
 0x23c   :  { %v812_v41 = vpop.f32.mrf.mxu2 }
 0x23d   :  { %v824_v44 = vmax.f32 %v766_v53, %v812_v41  ;;  %v862_v39 = vpop.f32.mrf.mxu3 }
 0x23f   :  { %v874_v45 = vmax.f32 %v824_v44, %v862_v39  ;;  %v769_v46 = vpop.f32.mrf.mxu1 }
 0x241   :  { %1638 = vmatmul.msk.f32.vlgmr.msrb.gmra.mxu2 %vm736_vm0, %v874_v45  ;;  %1650 = vmatmul.msk.f32.vlgmr.msrb.gmra.mxu3 %vm736_vm0, %v874_v45  ;;  %v882_v58 = vsub.f32 %v878_v40, %v874_v45 }
 0x242   :  { %1626 = vmatmul.msk.f32.vlgmr.msrb.gmra.mxu1 %vm736_vm0, %v874_v45 }
 0x243   :  { %v886_v59 = vmul.f32 %v882_v58, %v882_v58 }
 0x244   :  { %v815_v22 = vpop.f32.mrf.mxu2 }
 0x245   :  { %v825_v23 = vmax.f32 %v769_v46, %v815_v22  ;;  %v865_v2 = vpop.f32.mrf.mxu3  ;;  %v890_v3 = vsel %vm736_vm0, %v886_v59, 0.0 }
 0x246   :  { %891 = vadd.xlane.f32.xlu0 %v890_v3 }
 0x247   :  { %v875_v48 = vmax.f32 %v825_v23, %v865_v2  ;;  %v772_v49 = vpop.f32.mrf.mxu1 }
 0x249   :  { %1639 = vmatmul.msk.f32.gmra.mxu2 %vm736_vm0, %v875_v48  ;;  %1651 = vmatmul.msk.f32.gmra.mxu3 %vm736_vm0, %v875_v48  ;;  %v883_v61 = vsub.f32 %v879_v47, %v875_v48 }
 0x24a   :  { %1627 = vmatmul.msk.f32.gmra.mxu1 %vm736_vm0, %v875_v48 }
 0x24b   :  { %v887_v4 = vmul.f32 %v883_v61, %v883_v61 }
 0x24c   :  { %v818_v50 = vpop.f32.mrf.mxu2 }
 0x24d   :  { %v826_v32 = vmax.f32 %v772_v49, %v818_v50  ;;  %v868_v33 = vpop.f32.mrf.mxu3  ;;  %v893_v51 = vsel %vm736_vm0, %v887_v4, 0.0 }
 0x24e   :  { %894 = vadd.xlane.f32.xlu1 %v893_v51 }
 0x24f   :  { %v876_v55 = vmax.f32 %v826_v32, %v868_v33  ;;  %v775_v18 = vpop.f32.mrf.mxu1 }
 0x251   :  { %1640 = vmatmul.msk.f32.gmra.mxu2 %vm736_vm0, %v876_v55  ;;  %1652 = vmatmul.msk.f32.gmra.mxu3 %vm736_vm0, %v876_v55  ;;  %v884_v0 = vsub.f32 %v880_v54, %v876_v55 }
 0x252   :  { %1628 = vmatmul.msk.f32.gmra.mxu1 %vm736_vm0, %v876_v55 }
 0x253   :  { %v888_v19 = vmul.f32 %v884_v0, %v884_v0  ;;  %v1168_v0 = vld [vmem:[%s2523_s10] sm:$0xff] }
 0x254   :  { %v821_v12 = vpop.f32.mrf.mxu2 }
 0x255   :  { %v827_v13 = vmax.f32 %v775_v18, %v821_v12  ;;  %v871_v1 = vpop.f32.mrf.mxu3  ;;  %v896_v56 = vsel %vm736_vm0, %v888_v19, 0.0  ;;  %v1680_v18 = vld [vmem:[%s2523_s10 + $0x20] sm:$0xff]  ;;  %v1169_v19 = vld [vmem:[%s2523_s10 + $0x8] sm:$0xff] }
 0x256   :  { %897 = vadd.xlane.f32.xlu0 %v896_v56  ;;  %v1681_v12 = vld [vmem:[%s2523_s10 + $0x28] sm:$0xff]  ;;  %v1687_v56 = vld [vmem:[%s2524_s11 + $0x18] sm:$0xff] }
 0x257   :  { %v877_v60 = vmax.f32 %v827_v13, %v871_v1  ;;  %v1676_v13 = vld [vmem:[%s2523_s10 + $0x10] sm:$0xff]  ;;  %v1677_v1 = vld [vmem:[%s2523_s10 + $0x18] sm:$0xff]  ;;  %1337 = vmatpush.msrb.mxu2 %v1687_v56 }
 0x259   :  { %1641 = vmatmul.msk.f32.gmra.mxu2 %vm736_vm0, %v877_v60  ;;  %1653 = vmatmul.msk.f32.gmra.mxu3 %vm736_vm0, %v877_v60  ;;  %v885_v5 = vsub.f32 %v881_v57, %v877_v60  ;;  %v1691_v57 = vld [vmem:[%s2524_s11 + $0x28] sm:$0xff] }
 0x25a   :  { %1629 = vmatmul.msk.f32.gmra.mxu1 %vm736_vm0, %v877_v60  ;;  %v1290_v60 = vld [vmem:[%s2524_s11 + $0x8] sm:$0xff] }
 0x25b   :  { %v889_v6 = vmul.f32 %v885_v5, %v885_v5  ;;  %v1686_v5 = vld [vmem:[%s2524_s11 + $0x10] sm:$0xff]  ;;  %1311 = vmatpush.msrb.mxu1 %v1290_v60 }
 0x25c   :  { %1338 = vmatpush.msrb.mxu2 %v1686_v5 }
 0x25d   :  { %v899_v9 = vsel %vm736_vm0, %v889_v6, 0.0  ;;  %v1690_v6 = vld [vmem:[%s2524_s11 + $0x20] sm:$0xff] }
 0x25e   :  { %900 = vadd.xlane.f32.xlu2 %v899_v9  ;;  %v1289_v9 = vld [vmem:[%s2524_s11] sm:$0xff] }
 0x25f   :  { %1312 = vmatpush.msrb.mxu1 %v1289_v9 }
 0x2bf   :  { %v950_v30 = vpop.f32.mrf.mxu1 }
 0x2c4   :  { %v988_v31 = vpop.f32.mrf.mxu2  ;;  %v1030_v20 = vpop.f32.mrf.mxu3 }
 0x2c5   :  { %v1000_v21 = vmax.f32 %v950_v30, %v988_v31  ;;  %v1268_v31 = vld [vmem:[%s2516_s3 + $0x8] sm:$0xff] }
 0x2c7   :  { %v1042_v62 = vmax.f32 %v1000_v21, %v1030_v20  ;;  %v953_v63 = vpop.f32.mrf.mxu1 }
 0x2c9   :  { %1670 = vmatmul.msk.f32.vlgmr.msra.gmra.mxu2 %vm1050_vm1, %v1042_v62  ;;  %1654 = vmatmul.msk.f32.vlgmr.msrb.gmra.mxu0 %vm1050_vm1, %v1042_v62 }
 0x2ca   :  { %1662 = vmatmul.msk.f32.vlgmr.msra.gmra.mxu1 %vm1050_vm1, %v1042_v62 }
 0x2cc   :  { %v991_v25 = vpop.f32.mrf.mxu2  ;;  %v1033_v26 = vpop.f32.mrf.mxu3 }
 0x2cd   :  { %v1001_v28 = vmax.f32 %v953_v63, %v991_v25  ;;  %v1699_v25 = vld [vmem:[%s2525_s12 + $0x10] sm:$0xff] }
 0x2ce   :  { %1451 = vmatpush.msra.mxu2 %v1699_v25 }
 0x2cf   :  { %v1043_v29 = vmax.f32 %v1001_v28, %v1033_v26  ;;  %v956_v34 = vpop.f32.mrf.mxu1  ;;  %v1376_v26 = vld [vmem:[%s2525_s12] sm:$0xff]  ;;  %v1696_v28 = vld [vmem:[%s2525_s12 + $0x8] sm:$0xff] }
 0x2d0   :  { %1424 = vmatpush.msra.mxu1 %v1696_v28 }
 0x2d1   :  { %1671 = vmatmul.msk.f32.gmra.mxu2 %vm1050_vm1, %v1043_v29  ;;  %1655 = vmatmul.msk.f32.gmra.mxu0 %vm1050_vm1, %v1043_v29 }
 0x2d2   :  { %1663 = vmatmul.msk.f32.gmra.mxu1 %vm1050_vm1, %v1043_v29 }
 0x2d4   :  { %v994_v35 = vpop.f32.mrf.mxu2  ;;  %v1036_v36 = vpop.f32.mrf.mxu3 }
 0x2d5   :  { %v1002_v37 = vmax.f32 %v956_v34, %v994_v35 }
 0x2d7   :  { %v1044_v52 = vmax.f32 %v1002_v37, %v1036_v36  ;;  %v959_v38 = vpop.f32.mrf.mxu1 }
 0x2d9   :  { %1672 = vmatmul.msk.f32.gmra.mxu2 %vm1050_vm1, %v1044_v52  ;;  %1656 = vmatmul.msk.f32.gmra.mxu0 %vm1050_vm1, %v1044_v52 }
 0x2da   :  { %1664 = vmatmul.msk.f32.gmra.mxu1 %vm1050_vm1, %v1044_v52 }
 0x2dc   :  { %v997_v53 = vpop.f32.mrf.mxu2  ;;  %v1039_v44 = vpop.f32.mrf.mxu3 }
 0x2dd   :  { %v1003_v41 = vmax.f32 %v959_v38, %v997_v53 }
 0x2df   :  { %v1045_v39 = vmax.f32 %v1003_v41, %v1039_v44 }
 0x2e1   :  { %1673 = vmatmul.msk.f32.gmra.mxu2 %vm1050_vm1, %v1045_v39  ;;  %1657 = vmatmul.msk.f32.gmra.mxu0 %vm1050_vm1, %v1045_v39 }
 0x2e2   :  { %1665 = vmatmul.msk.f32.gmra.mxu1 %vm1050_vm1, %v1045_v39 }
 0x346   :  { %v1080_v40 = vpop.f32.mrf.mxu0 }
 0x347   :  { %v1114_v45 = vpop.f32.mrf.mxu1 }
 0x348   :  { %v1126_v51 = vmax.f32 %v1080_v40, %v1114_v45 }
 0x34c   :  { %v1152_v46 = vpop.f32.mrf.mxu2 }
 0x34d   :  { %v1164_v55 = vmax.f32 %v1126_v51, %v1152_v46 }
 0x34e   :  { %v1083_v58 = vpop.f32.mrf.mxu0 }
 0x34f   :  { %v1117_v59 = vpop.f32.mrf.mxu1 }
 0x350   :  { %v1127_v32 = vmax.f32 %v1083_v58, %v1117_v59 }
 0x354   :  { %v1155_v22 = vpop.f32.mrf.mxu2 }
 0x355   :  { %v1165_v54 = vmax.f32 %v1127_v32, %v1155_v22 }
 0x356   :  { %v1086_v23 = vpop.f32.mrf.mxu0 }
 0x357   :  { %v1120_v2 = vpop.f32.mrf.mxu1 }
 0x358   :  { %v1128_v4 = vmax.f32 %v1086_v23, %v1120_v2 }
 0x35c   :  { %v1158_v3 = vpop.f32.mrf.mxu2 }
 0x35d   :  { %v1166_v33 = vmax.f32 %v1128_v4, %v1158_v3 }
 0x35e   :  { %v1089_v47 = vpop.f32.mrf.mxu0 }
 0x35f   :  { %v1123_v48 = vpop.f32.mrf.mxu1 }
 0x360   :  { %v1129_v49 = vmax.f32 %v1089_v47, %v1123_v48  ;;  %v1461_v47 = vld [vmem:[%s2526_s13] sm:$0xff]  ;;  %v1705_v48 = vld [vmem:[%s2526_s13 + $0x10] sm:$0xff] }
 0x364   :  { %v1161_v61 = vpop.f32.mrf.mxu2 }
 0x365   :  { %v1167_v50 = vmax.f32 %v1129_v49, %v1161_v61  ;;  %v1703_v49 = vld [vmem:[%s2526_s13 + $0x8] sm:$0xff] }
 0x367   :  { %1188 = vmatpush.msra.mxu3 %v1167_v50  ;;  %1254 = vmatpush.msra.mxu0 %v1167_v50 }
 0x369   :  { %1189 = vmatpush.msra.mxu3 %v1166_v33  ;;  %1255 = vmatpush.msra.mxu0 %v1166_v33 }
 0x36b   :  { %1190 = vmatpush.msra.mxu3 %v1165_v54  ;;  %1256 = vmatpush.msra.mxu0 %v1165_v54 }
 0x36d   :  { %1191 = vmatpush.msra.mxu3 %v1164_v55  ;;  %1257 = vmatpush.msra.mxu0 %v1164_v55 }
 0x36e   :  { %1674 = vmatmul.msk.f32.vlgmr.msra.gmra.mxu3 %vm1050_vm1, %v1168_v0  ;;  %1682 = vmatmul.msk.f32.vlgmr.msra.gmra.mxu0 %vm1050_vm1, %v1680_v18  ;;  %v152_v18 = vpop.xlane.xlu1 %151 }
 0x36f   :  { %1220 = vmatpush.msrb.mxu3 %v1167_v50  ;;  %1399 = vmatpush.msrb.mxu0 %v1376_v26 }
 0x371   :  { %1221 = vmatpush.msrb.mxu3 %v1166_v33  ;;  %v1537_v33 = vld [vmem:[%s2517_s4] sm:$0xff]  ;;  %s1766_s4 = smov [#allocation5]  }
 0x372   :  { %s1562_s13 = sshll.u32 %s1766_s4, 4  ;;  %s1563_s13 = int_to_ptr.vmem [resolvable:$true] %s1562_s13 }
 0x373   :  { %1222 = vmatpush.msrb.mxu3 %v1165_v54 }
 0x375   :  { %1223 = vmatpush.msrb.mxu3 %v1164_v55 }
 0x376   :  { %1675 = vmatmul.msk.f32.gmra.mxu3 %vm1050_vm1, %v1169_v19  ;;  %1683 = vmatmul.msk.f32.gmra.mxu0 %vm1050_vm1, %v1681_v12  ;;  %v146_v19 = vpop.xlane.xlu0 %145  ;;  %v158_v12 = vpop.xlane.xlu2 %157 }
 0x377   :  { %1365 = vmatpush.msra.mxu3 %v1691_v57 }
 0x379   :  { %1366 = vmatpush.msra.mxu3 %v1690_v6 }
 0x37e   :  { %1678 = vmatmul.msk.f32.vlgmr.msrb.gmra.mxu3 %vm1050_vm1, %v1676_v13  ;;  %v155_v13 = vpop.xlane.xlu1 %154  ;;  %v161_v57 = vpop.xlane.xlu2 %160 }
 0x386   :  { %1679 = vmatmul.msk.f32.gmra.mxu3 %vm1050_vm1, %v1677_v1  ;;  %v149_v1 = vpop.xlane.xlu0 %148  ;;  %v167_v5 = vpop.xlane.xlu1 %166 }
 0x387   :  { %v168_v56 = vadd.f32 %v149_v1, %v146_v19 }
 0x389   :  { %v169_v60 = vadd.f32 %v168_v56, %v152_v18 }
 0x38b   :  { %v170_v6 = vadd.f32 %v169_v60, %v155_v13 }
 0x38e   :  { %v892_v9 = vpop.xlane.xlu0 %891 }
 0x3eb   :  { %v1259_v10 = vpop.f32.mrf.mxu0 }
 0x3f1   :  { %v1193_v24 = vpop.f32.mrf.mxu3 }
 0x3f3   :  { %v1262_v16 = vpop.f32.mrf.mxu0 }
 0x3f9   :  { %v1196_v27 = vpop.f32.mrf.mxu3 }
 0x401   :  { %v1225_v7 = vpop.f32.mrf.mxu3 }
 0x402   :  { %v1231_v8 = vmax.f32 %v1193_v24, %v1225_v7  ;;  %v164_v24 = vpop.xlane.xlu2 %163 }
 0x404   :  { %v1265_v14 = vmax.f32 %v1231_v8, %v1259_v10  ;;  %v895_v10 = vpop.xlane.xlu1 %894  ;;  %v898_v8 = vpop.xlane.xlu0 %897 }
 0x406   :  { %1688 = vmatmul.msk.f32.vlgmr.msrb.gmra.mxu2 %vm1273_vm2, %v1265_v14  ;;  %1692 = vmatmul.msk.f32.vlgmr.msra.gmra.mxu3 %vm1273_vm2, %v1265_v14  ;;  %v1269_v42 = vsub.f32 %v1267_v11, %v1265_v14 }
 0x407   :  { %1684 = vmatmul.msk.f32.vlgmr.msrb.gmra.mxu1 %vm1273_vm2, %v1265_v14  ;;  %v902_v14 = vadd.f32 %v895_v10, %v892_v9 }
 0x408   :  { %v1271_v15 = vmul.f32 %v1269_v42, %v1269_v42 }
 0x409   :  { %v1228_v43 = vpop.f32.mrf.mxu3 }
 0x40a   :  { %v1232_v17 = vmax.f32 %v1196_v27, %v1228_v43  ;;  %v1274_v30 = vsel %vm1273_vm2, %v1271_v15, 0.0  ;;  %v171_v27 = vadd.f32 %v170_v6, %v158_v12  ;;  %v901_v42 = vpop.xlane.xlu2 %900  ;;  %v903_v15 = vadd.f32 %v902_v14, %v898_v8 }
 0x40b   :  { %1275 = vadd.xlane.f32.xlu0 %v1274_v30 }
 0x40c   :  { %v1266_v20 = vmax.f32 %v1232_v17, %v1262_v16  ;;  %v172_v7 = vadd.f32 %v171_v27, %v161_v57  ;;  %v904_v17 = vadd.f32 %v903_v15, %v901_v42 }
 0x40e   :  { %1689 = vmatmul.msk.f32.gmra.mxu2 %vm1273_vm2, %v1266_v20  ;;  %1693 = vmatmul.msk.f32.gmra.mxu3 %vm1273_vm2, %v1266_v20  ;;  %v1270_v21 = vsub.f32 %v1268_v31, %v1266_v20  ;;  %v173_v11 = vadd.f32 %v172_v7, %v164_v24 }
 0x40f   :  { %1685 = vmatmul.msk.f32.gmra.mxu1 %vm1273_vm2, %v1266_v20 }
 0x410   :  { %v1272_v62 = vmul.f32 %v1270_v21, %v1270_v21  ;;  %v174_v16 = vadd.f32 %v173_v11, %v167_v5  ;;  %v905_v21 = vrot.slane %v904_v17, 4 }
 0x412   :  { %v1277_v63 = vsel %vm1273_vm2, %v1272_v62, 0.0  ;;  %v175_v20 = vrot.slane %v174_v16, 4  ;;  %v906_v25 = vadd.f32 %v905_v21, %v904_v17 }
 0x413   :  { %1278 = vadd.xlane.f32.xlu1 %v1277_v63 }
 0x414   :  { %v176_v63 = vadd.f32 %v175_v20, %v174_v16 }
 0x416   :  { %v177_v28 = vrot.slane %v176_v63, 2 }
 0x47e   :  { %v1276_v30 = vpop.xlane.xlu0 %1275 }
 0x484   :  { %v1314_v29 = vpop.f32.mrf.mxu1 }
 0x486   :  { %v1279_v43 = vpop.xlane.xlu1 %1278 }
 0x487   :  { %v1280_v31 = vadd.f32 %v1279_v43, %v1276_v30 }
 0x489   :  { %v1340_v34 = vpop.f32.mrf.mxu2  ;;  %v1368_v35 = vpop.f32.mrf.mxu3  ;;  %v1281_v62 = vrot.slane %v1280_v31, 4 }
 0x48a   :  { %v1346_v36 = vmax.f32 %v1314_v29, %v1340_v34  ;;  %v907_v29 = vrot.slane %v906_v25, 2 }
 0x48b   :  { %v1282_v26 = vadd.f32 %v1281_v62, %v1280_v31 }
 0x48c   :  { %v1374_v37 = vmax.f32 %v1346_v36, %v1368_v35  ;;  %v1317_v52 = vpop.f32.mrf.mxu1  ;;  %v178_v35 = vadd.f32 %v177_v28, %v176_v63  ;;  %v908_v36 = vadd.f32 %v907_v29, %v906_v25 }
 0x48d   :  { %v1283_v34 = vrot.slane %v1282_v26, 2 }
 0x48e   :  { %1700 = vmatmul.msk.f32.vlgmr.msra.gmra.mxu2 %vm1377_vm3, %v1374_v37  ;;  %1694 = vmatmul.msk.f32.vlgmr.msrb.gmra.mxu0 %vm1377_vm3, %v1374_v37 }
 0x48f   :  { %1697 = vmatmul.msk.f32.vlgmr.msra.gmra.mxu1 %vm1377_vm3, %v1374_v37  ;;  %v1284_v37 = vadd.f32 %v1283_v34, %v1282_v26 }
 0x491   :  { %v1343_v38 = vpop.f32.mrf.mxu2  ;;  %v1371_v41 = vpop.f32.mrf.mxu3 }
 0x492   :  { %v1347_v53 = vmax.f32 %v1317_v52, %v1343_v38  ;;  %v179_v52 = vrot.slane %v178_v35, 1  ;;  %v909_v38 = vrot.slane %v908_v36, 1 }
 0x494   :  { %v1375_v44 = vmax.f32 %v1347_v53, %v1371_v41  ;;  %v1285_v41 = vrot.slane %v1284_v37, 1 }
 0x496   :  { %1701 = vmatmul.msk.f32.gmra.mxu2 %vm1377_vm3, %v1375_v44  ;;  %1695 = vmatmul.msk.f32.gmra.mxu0 %vm1377_vm3, %v1375_v44 }
 0x497   :  { %1698 = vmatmul.msk.f32.gmra.mxu1 %vm1377_vm3, %v1375_v44 }
 0x50b   :  { %v1401_v39 = vpop.f32.mrf.mxu0 }
 0x50c   :  { %v1426_v40 = vpop.f32.mrf.mxu1 }
 0x50d   :  { %v1432_v23 = vmax.f32 %v1401_v39, %v1426_v40  ;;  %v180_v39 = vadd.f32 %v179_v52, %v178_v35  ;;  %v910_v40 = vadd.f32 %v909_v38, %v908_v36 }
 0x511   :  { %v1453_v45 = vpop.f32.mrf.mxu2 }
 0x512   :  { %v1459_v3 = vmax.f32 %v1432_v23, %v1453_v45  ;;  %v911_v23 = vmul.f32 0.00012207031, %v910_v40 }
 0x513   :  { %v1404_v46 = vpop.f32.mrf.mxu0 }
 0x514   :  { %v1429_v58 = vpop.f32.mrf.mxu1 }
 0x515   :  { %v1433_v59 = vmax.f32 %v1404_v46, %v1429_v58  ;;  %v1286_v46 = vadd.f32 %v1285_v41, %v1284_v37 }
 0x519   :  { %v1456_v22 = vpop.f32.mrf.mxu2 }
 0x51a   :  { %v1460_v2 = vmax.f32 %v1433_v59, %v1456_v22  ;;  %v1552_v59 = vlaneseq  ;;  %v181_v22 = vmul.f32 6.1035156e-05, %v180_v39 }
 0x51c   :  { %1479 = vmatpush.msrb.mxu3 %v1460_v2  ;;  %1530 = vmatpush.msra.mxu0 %v1460_v2 }
 0x51e   :  { %1480 = vmatpush.msrb.mxu3 %v1459_v3  ;;  %1531 = vmatpush.msra.mxu0 %v1459_v3 }
 0x51f   :  { %1702 = vmatmul.msk.f32.vlgmr.msrb.gmra.mxu3 %vm1273_vm2, %v1461_v47  ;;  %1706 = vmatmul.msk.f32.vlgmr.msra.gmra.mxu0 %vm1273_vm2, %v1705_v48  ;;  %v1553_v48 = vand.u32 127, %v1552_v59 }
 0x520   :  { %1504 = vmatpush.msra.mxu3 %v1460_v2 }
 0x521   :  { %vm1554_vm5 = vcmp.eq.s32.totalorder %v1553_v48, 0 }
 0x522   :  { %1505 = vmatpush.msra.mxu3 %v1459_v3  ;;  %v1287_v3 = vmul.f32 0.00024414063, %v1286_v46 }
 0x527   :  { %1704 = vmatmul.msk.f32.vlgmr.msra.gmra.mxu3 %vm1273_vm2, %v1703_v49  ;;  %v912_v49 = vadd.f32 %v911_v23, %v181_v22 }
 0x59c   :  { %v1533_v50 = vpop.f32.mrf.mxu0 }
 0x5a2   :  { %v1482_v61 = vpop.f32.mrf.mxu3 }
 0x5aa   :  { %v1507_v4 = vpop.f32.mrf.mxu3 }
 0x5ab   :  { %v1510_v32 = vmax.f32 %v1482_v61, %v1507_v4 }
 0x5ad   :  { %v1536_v51 = vmax.f32 %v1510_v32, %v1533_v50  ;;  %v1288_v50 = vadd.f32 %v1287_v3, %v912_v49 }
 0x5af   :  { %v1538_v54 = vsub.f32 %v1537_v33, %v1536_v51 }
 0x5b1   :  { %v1539_v55 = vmul.f32 %v1538_v54, %v1538_v54 }
 0x5b3   :  { %v1541_v0 = vsel %vm1540_vm4, %v1539_v55, 0.0 }
 0x5b4   :  { %1542 = vadd.xlane.f32.xlu2 %v1541_v0 }
 0x627   :  { %v1543_v53 = vpop.xlane.xlu2 %1542 }
 0x628   :  { %v1544_v44 = vrot.slane %v1543_v53, 4 }
 0x62a   :  { %v1545_v45 = vadd.f32 %v1544_v44, %v1543_v53 }
 0x62c   :  { %v1546_v58 = vrot.slane %v1545_v45, 2 }
 0x62e   :  { %v1547_v2 = vadd.f32 %v1546_v58, %v1545_v45 }
 0x630   :  { %v1548_v47 = vrot.slane %v1547_v2, 1 }
 0x632   :  { %v1549_v61 = vadd.f32 %v1548_v47, %v1547_v2 }
 0x634   :  { %v1550_v4 = vmul.f32 0.00048828125, %v1549_v61 }
 0x636   :  { %v1551_v32 = vadd.f32 %v1550_v4, %v1288_v50 }
 0x638   :  { %v1555_v33 = vsel %vm1554_vm5, %v1551_v32, 0.0 }
 0x639   :  { %1556 = vst [vmem:[#allocation5] sm:$0x1] %v1555_v33 }
 0x63a   :  { %1567 = dma.vmem_to_hbm [thread:$0]  %s1563_s13, 16, %s1565_s27, [#allocation4]  }
 0x63b   :  { %1761 = dma.done.wait [#allocation4], 16  }
 0x63c   :  { %1762 = vsyncadd [#allocation4], 4294967280 }
 0x63d   :  { %1572 = vsyncpa [#allocation3], 1 }
 0x63e   :  { %1573 = vsyncpa [#allocation4], 1 }

</bundles_post_ra>
